<compile_context>
chip_gen: v5e
topology: v5e:2x2
jax: 0.10.0
libtpu: 0.0.40
codegen_flags: <defaults>
</compile_context>

<pallas_src>
import functools

import numpy as np
import jax
import jax.numpy as jnp
from jax.experimental import pallas as pl
from jax.experimental.pallas import tpu as pltpu

_LN_EPS = 1e-5                     # torch.nn.LayerNorm default
_MXU_DTYPE = jnp.float32           # switch to jnp.bfloat16 at production dims
                                   # (bf16-native MXU on v6e/v7x); f32 kept here
                                   # so the toy-size accuracy check stays tight.
_NEG_INF = -1e30                   # finite "minus infinity" for the batch mask


def _hardswish(x):
    return x * jnp.clip(x + 3.0, 0.0, 6.0) * (1.0 / 6.0)


def _layernorm(x, gamma, beta):
    mu = jnp.mean(x, axis=-1, keepdims=True)
    var = jnp.mean((x - mu) ** 2, axis=-1, keepdims=True)
    return (x - mu) * jax.lax.rsqrt(var + _LN_EPS) * gamma + beta


def _mm(a, b):
    """a @ b on the MXU, f32 accumulation (NN form)."""
    return jax.lax.dot_general(
        a.astype(_MXU_DTYPE), b.astype(_MXU_DTYPE),
        (((1,), (0,)), ((), ())), preferred_element_type=jnp.float32)


def _mm_t(a, b):
    """a @ b.T without materializing the transpose (NT form)."""
    return jax.lax.dot_general(
        a.astype(_MXU_DTYPE), b.astype(_MXU_DTYPE),
        (((1,), (1,)), ((), ())), preferred_element_type=jnp.float32)


# ---------------------------------------------------------------------------
# Host-side (numpy) constants: shift operator, attention batch mask, CLS mask.
# ---------------------------------------------------------------------------
def _shift_matrices_np(hh, ww):
    """(9, N, N) 0/1 matrices realizing the zero-padded 3x3 depthwise-conv
    shifts on the token axis (row/col 0 == CLS token, excluded)."""
    n = hh * ww + 1
    m = np.zeros((9, n, n), np.float32)
    for ky in range(3):
        for kx in range(3):
            k = ky * 3 + kx
            dy, dx = ky - 1, kx - 1
            for y in range(hh):
                for x_ in range(ww):
                    yy, xx = y + dy, x_ + dx
                    if 0 <= yy < hh and 0 <= xx < ww:
                        m[k, 1 + y * ww + x_, 1 + yy * ww + xx] = 1.0
    return m


def _build_constants(hh, ww, b_blk):
    n = hh * ww + 1
    m = b_blk * n
    s9 = _shift_matrices_np(hh, ww)
    # Stacked (over the 9 taps) block-diagonal (over the batch block) shift
    # operator: one (9M, M) matmul replaces 9 tiny per-tap matmuls.
    s_cat = np.zeros((9 * m, m), np.float32)
    for k in range(9):
        for b in range(b_blk):
            s_cat[k * m + b * n:k * m + (b + 1) * n, b * n:(b + 1) * n] = s9[k]
    # Additive attention bias: 0 within a batch element, -1e30 across elements.
    bid = np.repeat(np.arange(b_blk), n)
    attn_bias = np.where(bid[:, None] == bid[None, :], 0.0, _NEG_INF)
    attn_bias = attn_bias.astype(np.float32)
    # FF residual mask: 0 on CLS rows (ExcludeCLS), 1 elsewhere.
    tok = np.tile(np.arange(n), b_blk)
    ff_mask = (tok != 0).astype(np.float32)[:, None]
    return jnp.asarray(s_cat), jnp.asarray(attn_bias), jnp.asarray(ff_mask)


# ---------------------------------------------------------------------------
# One (batch-block, layer) grid step.  The activation is carried in o_ref
# across the (innermost, "arbitrary") depth axis.
# ---------------------------------------------------------------------------
def _transformer_layer_kernel(x_ref, ga_ref, ba_ref, wqkv_ref, wo_ref, bo_ref,
                              gf_ref, bf_ref, w1_ref, b1_ref, wdw_ref, bdw_ref,
                              wpw_ref, bpw_ref, w2_ref, b2_ref,
                              scat_ref, bias_ref, ffm_ref, o_ref,
                              *, heads, dim_head):
    layer = pl.program_id(1)
    inner = heads * dim_head
    scale = float(dim_head) ** -0.5
    m_rows = x_ref.shape[1]                       # M = B_BLK * N

    @pl.when(layer == 0)
    def _():                                      # seed the carried activation
        o_ref[...] = x_ref[...]

    x = o_ref[0].astype(jnp.float32)              # (M, D)

    # ---------------- Residual(PreNorm(Attention)) ----------------
    xn = _layernorm(x, ga_ref[0], ba_ref[0])
    # Fused QKV projection; weight stored pre-transposed (3*inner, D) so heads
    # land on 8-row-aligned sublane slices of the result.
    qkv_t = _mm_t(wqkv_ref[0], xn)                # (3*inner, M)
    bias = bias_ref[...]                          # (M, M) block-diag batch mask
    oh_list = []
    for h in range(heads):
        lo = h * dim_head
        q = qkv_t[lo:lo + dim_head, :].T * scale                   # (M, dh)
        kT = qkv_t[inner + lo:inner + lo + dim_head, :]            # (dh, M)
        vT = qkv_t[2 * inner + lo:2 * inner + lo + dim_head, :]    # (dh, M)
        dots = _mm(q, kT) + bias                                   # (M, M)
        dots = dots - jnp.max(dots, axis=-1, keepdims=True)
        e = jnp.exp(dots)
        p = e * pl.reciprocal(jnp.sum(e, axis=-1, keepdims=True), approx=True)
        oh_list.append(_mm_t(p, vT))                               # (M, dh)
    oh_all = jnp.concatenate(oh_list, axis=1)                      # (M, inner)
    x = _mm(oh_all, wo_ref[0]) + bo_ref[0] + x    # single K=inner projection

    # -------- ExcludeCLS(Residual(PreNorm(FeedForward))) --------
    xn = _layernorm(x, gf_ref[0], bf_ref[0])      # CLS row computed, discarded
    h1 = _hardswish(_mm(xn, w1_ref[0]) + b1_ref[0])                # (M, C)
    # 3x3 depthwise conv: ONE matmul against the stacked block-diagonal shift
    # operator, then per-tap channel weights on row-slices of the result.
    z = _mm(scat_ref[...], h1)                                     # (9M, C)
    wdw_l = wdw_ref[0]                                             # (9, C)
    acc = jnp.broadcast_to(bdw_ref[0], h1.shape)                   # (M, C)
    for k in range(9):
        acc = acc + z[k * m_rows:(k + 1) * m_rows, :] * wdw_l[k:k + 1, :]
    h2 = _hardswish(_mm(acc, wpw_ref[0]) + bpw_ref[0])
    y = _mm(h2, w2_ref[0]) + b2_ref[0]
    x = x + y * ffm_ref[...]                      # CLS rows pass through

    o_ref[0] = x.astype(o_ref.dtype)


# ---------------------------------------------------------------------------
# Wrapper: batch-blocked, depth-streamed pallas_call.
# ---------------------------------------------------------------------------
def transformer_forward(x, params, *, hh, ww, heads, dim_head, b_blk=2):
    B, N, D = x.shape
    assert N == 1 + hh * ww
    assert B % b_blk == 0
    nb = B // b_blk
    M = b_blk * N
    depth = params["ga"].shape[0]
    inner = heads * dim_head
    C = params["w1"].shape[2]

    s_cat, attn_bias, ff_mask = _build_constants(hh, ww, b_blk)
    xr = x.reshape(nb, M, D)                      # contiguous, free reshape

    weight_order = ("ga", "ba", "wqkv_t", "wo", "bo",
                    "gf", "bf", "w1", "b1", "wdw", "bdw", "wpw", "bpw", "w2", "b2")
    weights = [params[k] for k in weight_order]

    def _wspec(a):                                # stream one layer's slice
        nd = a.ndim
        return pl.BlockSpec((1,) + tuple(a.shape[1:]),
                            lambda b, l, _nd=nd: (l,) + (0,) * (_nd - 1))

    def _cspec(a):                                # constant, loaded once
        nd = a.ndim
        return pl.BlockSpec(tuple(a.shape), lambda b, l, _nd=nd: (0,) * _nd)

    # VMEM budget: per-layer weights (double-buffered) + constants + activation
    # blocks + intermediate headroom; capped so it also fits v7x (64 MiB).
    per_layer_w = sum(int(np.prod(w.shape[1:])) * np.dtype(w.dtype).itemsize
                      for w in weights)
    const_b = sum(int(np.prod(c.shape)) * 4 for c in (s_cat, attn_bias, ff_mask))
    io_b = 2 * 2 * M * D * np.dtype(x.dtype).itemsize
    interm_b = 4 * (M * 3 * inner + 2 * M * M + 14 * M * C + 6 * M * D)
    needed = 2 * per_layer_w + const_b + io_b + interm_b
    vmem_limit = int(min(max(2 * needed, 32 * 2 ** 20), 56 * 2 ** 20))

    kernel = functools.partial(_transformer_layer_kernel,
                               heads=heads, dim_head=dim_head)

    out = pl.pallas_call(
        kernel,
        out_shape=jax.ShapeDtypeStruct((nb, M, D), x.dtype),
        grid=(nb, depth),
        in_specs=[pl.BlockSpec((1, M, D), lambda b, l: (b, 0, 0))]
                 + [_wspec(w) for w in weights]
                 + [_cspec(c) for c in (s_cat, attn_bias, ff_mask)],
        out_specs=pl.BlockSpec((1, M, D), lambda b, l: (b, 0, 0)),
        compiler_params=pltpu.CompilerParams(
            dimension_semantics=("parallel", "arbitrary"),
            vmem_limit_bytes=vmem_limit),
    )(xr, *weights, s_cat, attn_bias, ff_mask)
    return out.reshape(B, N, D)


# ---------------------------------------------------------------------------
# Deterministic synthetic parameters (depth-stacked) — no checkpoint load.
# ---------------------------------------------------------------------------
def init_params(key, dim, depth, heads, dim_head, mlp_dim):
    inner = heads * dim_head

    def nrm(k, shape, s=0.1):
        return (s * jax.random.normal(k, shape)).astype(jnp.float32)

    ks = jax.random.split(key, 11)
    return dict(
        ga=jnp.ones((depth, 1, dim), jnp.float32),
        ba=jnp.zeros((depth, 1, dim), jnp.float32),
        wqkv_t=nrm(ks[0], (depth, 3 * inner, dim)),        # stored transposed
        wo=nrm(ks[1], (depth, inner, dim)),
        bo=nrm(ks[2], (depth, 1, dim), 0.02),
        gf=jnp.ones((depth, 1, dim), jnp.float32),
        bf=jnp.zeros((depth, 1, dim), jnp.float32),
        w1=nrm(ks[3], (depth, dim, mlp_dim)),
        b1=nrm(ks[4], (depth, 1, mlp_dim), 0.02),
        wdw=nrm(ks[5], (depth, 9, mlp_dim)),               # 3x3 taps (ky*3+kx, C)
        bdw=nrm(ks[6], (depth, 1, mlp_dim), 0.02),
        wpw=nrm(ks[7], (depth, mlp_dim, mlp_dim)),
        bpw=nrm(ks[8], (depth, 1, mlp_dim), 0.02),
        w2=nrm(ks[9], (depth, mlp_dim, dim)),
        b2=nrm(ks[10], (depth, 1, dim), 0.02),
    )


# ---------------------------------------------------------------------------
# Pure-JAX reference (same math, same parameter layout) for validation.
# ---------------------------------------------------------------------------
def transformer_ref(x, p, *, hh, ww, heads, dim_head):
    depth = p["ga"].shape[0]
    B, N, D = x.shape
    inner = heads * dim_head
    scale = float(dim_head) ** -0.5
    hw = hh * ww
    for l in range(depth):
        xn = _layernorm(x, p["ga"][l], p["ba"][l])
        qkv = jnp.einsum("bnd,cd->bnc", xn, p["wqkv_t"][l])      # (B, N, 3*inner)
        q, k, v = jnp.split(qkv, 3, axis=-1)

        def heads_first(t):
            return t.reshape(B, N, heads, dim_head).transpose(0, 2, 1, 3)

        q, k, v = heads_first(q), heads_first(k), heads_first(v)
        dots = jnp.einsum("bhid,bhjd->bhij", q, k) * scale
        attn = jax.nn.softmax(dots, axis=-1)
        o = jnp.einsum("bhij,bhjd->bhid", attn, v)
        o = o.transpose(0, 2, 1, 3).reshape(B, N, inner)
        x = o @ p["wo"][l] + p["bo"][l] + x

        cls_tok, rest = x[:, :1], x[:, 1:]
        rn = _layernorm(rest, p["gf"][l], p["bf"][l])
        h1 = _hardswish(rn @ p["w1"][l] + p["b1"][l])
        C = h1.shape[-1]
        img = h1.reshape(B, hh, ww, C)
        pad = jnp.pad(img, ((0, 0), (1, 1), (1, 1), (0, 0)))
        dw = jnp.zeros_like(img) + p["bdw"][l]
        for ky in range(3):
            for kx in range(3):
                dw = dw + pad[:, ky:ky + hh, kx:kx + ww, :] * p["wdw"][l, ky * 3 + kx]
        dw = dw.reshape(B, hw, C)
        h2 = _hardswish(dw @ p["wpw"][l] + p["bpw"][l])
        y = h2 @ p["w2"][l] + p["b2"][l]
        x = jnp.concatenate([cls_tok, rest + y], axis=1)
    return x


if __name__ == "__main__":
    dim, depth, heads, dim_head, mlp_dim = 32, 2, 4, 8, 64
    hh = ww = 4
    n = 1 + hh * ww                 # CLS token + 4x4 patch grid
    batch, b_blk = 4, 2             # grid = (batch/b_blk, depth) = (2, 2)

    key = jax.random.PRNGKey(0)
    kx, kp = jax.random.split(key)
    x = jax.random.normal(kx, (batch, n, dim), jnp.float32)
    params = init_params(kp, dim, depth, heads, dim_head, mlp_dim)

    fwd = jax.jit(functools.partial(transformer_forward, hh=hh, ww=ww,
                                    heads=heads, dim_head=dim_head, b_blk=b_blk))
    out = jax.block_until_ready(fwd(x, params))

    ref = transformer_ref(x, params, hh=hh, ww=ww, heads=heads, dim_head=dim_head)
    assert out.shape == (batch, n, dim)
    err = float(jnp.max(jnp.abs(out - ref)))
    # Tolerance loosened from 2e-4 because the softmax denominator uses the
    # EUP approximate reciprocal.
    assert err < 1e-2, f"mismatch vs reference: {err}"
    print("KERNEL_OK")
</pallas_src>

<mosaic_0001>
module attributes {stable_mosaic.version = 11 : i64} {
  func.func @_transformer_layer_kernel(%arg0: i32, %arg1: i32, %arg2: memref<1x34x32xf32, #tpu.memory_space<vmem>>, %arg3: memref<1x1x32xf32, #tpu.memory_space<vmem>>, %arg4: memref<1x1x32xf32, #tpu.memory_space<vmem>>, %arg5: memref<1x96x32xf32, #tpu.memory_space<vmem>>, %arg6: memref<1x32x32xf32, #tpu.memory_space<vmem>>, %arg7: memref<1x1x32xf32, #tpu.memory_space<vmem>>, %arg8: memref<1x1x32xf32, #tpu.memory_space<vmem>>, %arg9: memref<1x1x32xf32, #tpu.memory_space<vmem>>, %arg10: memref<1x32x64xf32, #tpu.memory_space<vmem>>, %arg11: memref<1x1x64xf32, #tpu.memory_space<vmem>>, %arg12: memref<1x9x64xf32, #tpu.memory_space<vmem>>, %arg13: memref<1x1x64xf32, #tpu.memory_space<vmem>>, %arg14: memref<1x64x64xf32, #tpu.memory_space<vmem>>, %arg15: memref<1x1x64xf32, #tpu.memory_space<vmem>>, %arg16: memref<1x64x32xf32, #tpu.memory_space<vmem>>, %arg17: memref<1x1x32xf32, #tpu.memory_space<vmem>>, %arg18: memref<306x34xf32, #tpu.memory_space<vmem>>, %arg19: memref<34x34xf32, #tpu.memory_space<vmem>>, %arg20: memref<34x1xf32, #tpu.memory_space<vmem>>, %arg21: memref<1x34x32xf32, #tpu.memory_space<vmem>>) attributes {dimension_semantics = [#tpu.dimension_semantics<parallel>, #tpu.dimension_semantics<arbitrary>], iteration_bounds = array<i64: 2, 2>, scalar_prefetch = 0 : i64, scratch_operands = 0 : i64, tpu.core_type = #tpu.core_type<tc>, window_params = [{transform_indices = @transform_0, window_bounds = array<i64: 1, 34, 32>}, {transform_indices = @transform_1, window_bounds = array<i64: 1, 1, 32>}, {transform_indices = @transform_2, window_bounds = array<i64: 1, 1, 32>}, {transform_indices = @transform_3, window_bounds = array<i64: 1, 96, 32>}, {transform_indices = @transform_4, window_bounds = array<i64: 1, 32, 32>}, {transform_indices = @transform_5, window_bounds = array<i64: 1, 1, 32>}, {transform_indices = @transform_6, window_bounds = array<i64: 1, 1, 32>}, {transform_indices = @transform_7, window_bounds = array<i64: 1, 1, 32>}, {transform_indices = @transform_8, window_bounds = array<i64: 1, 32, 64>}, {transform_indices = @transform_9, window_bounds = array<i64: 1, 1, 64>}, {transform_indices = @transform_10, window_bounds = array<i64: 1, 9, 64>}, {transform_indices = @transform_11, window_bounds = array<i64: 1, 1, 64>}, {transform_indices = @transform_12, window_bounds = array<i64: 1, 64, 64>}, {transform_indices = @transform_13, window_bounds = array<i64: 1, 1, 64>}, {transform_indices = @transform_14, window_bounds = array<i64: 1, 64, 32>}, {transform_indices = @transform_15, window_bounds = array<i64: 1, 1, 32>}, {pipeline_mode = #tpu.pipeline_mode<synchronous>, transform_indices = @transform_16, window_bounds = array<i64: 306, 34>}, {pipeline_mode = #tpu.pipeline_mode<synchronous>, transform_indices = @transform_17, window_bounds = array<i64: 34, 34>}, {pipeline_mode = #tpu.pipeline_mode<synchronous>, transform_indices = @transform_18, window_bounds = array<i64: 34, 1>}, {transform_indices = @transform_19, window_bounds = array<i64: 1, 34, 32>}]} {
    %c0_i32 = arith.constant 0 : i32
    %0 = arith.cmpi eq, %arg1, %c0_i32 : i32
    %1 = arith.extui %0 : i1 to i32
    %c0_i32_0 = arith.constant 0 : i32
    %2 = arith.cmpi ne, %1, %c0_i32_0 : i32
    scf.if %2 {
      %c0_100 = arith.constant 0 : index
      %c0_101 = arith.constant 0 : index
      %c0_102 = arith.constant 0 : index
      %245 = vector.load %arg2[%c0_100, %c0_101, %c0_102] : memref<1x34x32xf32, #tpu.memory_space<vmem>>, vector<1x34x32xf32>
      %c0_103 = arith.constant 0 : index
      %c0_104 = arith.constant 0 : index
      %c0_105 = arith.constant 0 : index
      %246 = vector.load %arg21[%c0_103, %c0_104, %c0_105] : memref<1x34x32xf32, #tpu.memory_space<vmem>>, vector<1x34x32xf32>
      tpu.vector_store %arg21[%c0_103, %c0_104, %c0_105], %245 {strides = array<i32>} : memref<1x34x32xf32, #tpu.memory_space<vmem>>, vector<1x34x32xf32>,
    } else {
    }
    %c0 = arith.constant 0 : index
    %c0_1 = arith.constant 0 : index
    %c0_2 = arith.constant 0 : index
    %3 = vector.load %arg21[%c0, %c0_1, %c0_2] : memref<1x34x32xf32, #tpu.memory_space<vmem>>, vector<1x34x32xf32>
    %4 = vector.shape_cast %3 : vector<1x34x32xf32> to vector<34x32xf32>
    %c0_3 = arith.constant 0 : index
    %c0_4 = arith.constant 0 : index
    %c0_5 = arith.constant 0 : index
    %5 = vector.load %arg3[%c0_3, %c0_4, %c0_5] : memref<1x1x32xf32, #tpu.memory_space<vmem>>, vector<1x1x32xf32>
    %6 = vector.shape_cast %5 : vector<1x1x32xf32> to vector<1x32xf32>
    %c0_6 = arith.constant 0 : index
    %c0_7 = arith.constant 0 : index
    %c0_8 = arith.constant 0 : index
    %7 = vector.load %arg4[%c0_6, %c0_7, %c0_8] : memref<1x1x32xf32, #tpu.memory_space<vmem>>, vector<1x1x32xf32>
    %8 = vector.shape_cast %7 : vector<1x1x32xf32> to vector<1x32xf32>
    %cst = arith.constant dense<0.000000e+00> : vector<34xf32>
    %9 = vector.multi_reduction <add>, %4, %cst [1] : vector<34x32xf32> to vector<34xf32>
    %10 = vector.shape_cast %9 : vector<34xf32> to vector<34x1xf32>
    %cst_9 = arith.constant 3.200000e+01 : f32
    %11 = vector.broadcast %cst_9 : f32 to vector<34x1xf32>
    %12 = arith.divf %10, %11 : vector<34x1xf32>
    %13 = vector.broadcast %12 : vector<34x1xf32> to vector<34x32xf32>
    %14 = arith.subf %4, %13 : vector<34x32xf32>
    %15 = arith.mulf %14, %14 : vector<34x32xf32>
    %cst_10 = arith.constant dense<0.000000e+00> : vector<34xf32>
    %16 = vector.multi_reduction <add>, %15, %cst_10 [1] : vector<34x32xf32> to vector<34xf32>
    %17 = vector.shape_cast %16 : vector<34xf32> to vector<34x1xf32>
    %cst_11 = arith.constant 3.200000e+01 : f32
    %18 = vector.broadcast %cst_11 : f32 to vector<34x1xf32>
    %19 = arith.divf %17, %18 : vector<34x1xf32>
    %20 = vector.broadcast %12 : vector<34x1xf32> to vector<34x32xf32>
    %21 = arith.subf %4, %20 : vector<34x32xf32>
    %cst_12 = arith.constant 9.99999974E-6 : f32
    %22 = vector.broadcast %cst_12 : f32 to vector<34x1xf32>
    %23 = arith.addf %19, %22 : vector<34x1xf32>
    %24 = math.rsqrt %23 : vector<34x1xf32>
    %25 = vector.broadcast %24 : vector<34x1xf32> to vector<34x32xf32>
    %26 = arith.mulf %21, %25 : vector<34x32xf32>
    %27 = vector.broadcast %6 : vector<1x32xf32> to vector<34x32xf32>
    %28 = arith.mulf %26, %27 : vector<34x32xf32>
    %29 = vector.broadcast %8 : vector<1x32xf32> to vector<34x32xf32>
    %30 = arith.addf %28, %29 : vector<34x32xf32>
    %c0_13 = arith.constant 0 : index
    %c0_14 = arith.constant 0 : index
    %c0_15 = arith.constant 0 : index
    %31 = vector.load %arg5[%c0_13, %c0_14, %c0_15] : memref<1x96x32xf32, #tpu.memory_space<vmem>>, vector<1x96x32xf32>
    %32 = vector.shape_cast %31 : vector<1x96x32xf32> to vector<96x32xf32>
    %cst_16 = arith.constant dense<0.000000e+00> : vector<96x34xf32>
    %33 = tpu.matmul %32, %30, %cst_16 {dimension_numbers = #tpu.dot_dimension_numbers<[1], [1], [0], [0], [0, 0, 1, 0], [], []>} : vector<96x32xf32>, vector<34x32xf32>, vector<96x34xf32> -> vector<96x34xf32>
    %c0_17 = arith.constant 0 : index
    %c0_18 = arith.constant 0 : index
    %34 = vector.load %arg19[%c0_17, %c0_18] : memref<34x34xf32, #tpu.memory_space<vmem>>, vector<34x34xf32>
    %35 = vector.extract_strided_slice %33 {offsets = [0, 0], sizes = [8, 34], strides = [1, 1]} : vector<96x34xf32> to vector<8x34xf32>
    %36 = tpu.transpose %35, [1, 0] : vector<8x34xf32> -> vector<34x8xf32>
    %cst_19 = arith.constant 0.353553385 : f32
    %37 = vector.broadcast %cst_19 : f32 to vector<34x8xf32>
    %38 = arith.mulf %36, %37 : vector<34x8xf32>
    %39 = vector.extract_strided_slice %33 {offsets = [32, 0], sizes = [8, 34], strides = [1, 1]} : vector<96x34xf32> to vector<8x34xf32>
    %40 = vector.extract_strided_slice %33 {offsets = [64, 0], sizes = [8, 34], strides = [1, 1]} : vector<96x34xf32> to vector<8x34xf32>
    %cst_20 = arith.constant dense<0.000000e+00> : vector<34x34xf32>
    %41 = tpu.matmul %38, %39, %cst_20 {dimension_numbers = #tpu.dot_dimension_numbers<[1], [0], [0], [1], [0, 0, 1, 1], [], []>} : vector<34x8xf32>, vector<8x34xf32>, vector<34x34xf32> -> vector<34x34xf32>
    %42 = arith.addf %41, %34 : vector<34x34xf32>
    %cst_21 = arith.constant dense<0xFF800000> : vector<34xf32>
    %43 = vector.multi_reduction <maximumf>, %42, %cst_21 [1] : vector<34x34xf32> to vector<34xf32>
    %44 = vector.shape_cast %43 : vector<34xf32> to vector<34x1xf32>
    %45 = vector.broadcast %44 : vector<34x1xf32> to vector<34x34xf32>
    %46 = arith.subf %42, %45 : vector<34x34xf32>
    %47 = math.exp %46 : vector<34x34xf32>
    %cst_22 = arith.constant dense<0.000000e+00> : vector<34xf32>
    %48 = vector.multi_reduction <add>, %47, %cst_22 [1] : vector<34x34xf32> to vector<34xf32>
    %49 = vector.shape_cast %48 : vector<34xf32> to vector<34x1xf32>
    %50 = tpu.reciprocal %49 {approx = true} : vector<34x1xf32> -> vector<34x1xf32>
    %51 = vector.broadcast %50 : vector<34x1xf32> to vector<34x34xf32>
    %52 = arith.mulf %47, %51 : vector<34x34xf32>
    %cst_23 = arith.constant dense<0.000000e+00> : vector<34x8xf32>
    %53 = tpu.matmul %52, %40, %cst_23 {dimension_numbers = #tpu.dot_dimension_numbers<[1], [1], [0], [0], [0, 0, 1, 0], [], []>} : vector<34x34xf32>, vector<8x34xf32>, vector<34x8xf32> -> vector<34x8xf32>
    %54 = vector.extract_strided_slice %33 {offsets = [8, 0], sizes = [8, 34], strides = [1, 1]} : vector<96x34xf32> to vector<8x34xf32>
    %55 = tpu.transpose %54, [1, 0] : vector<8x34xf32> -> vector<34x8xf32>
    %cst_24 = arith.constant 0.353553385 : f32
    %56 = vector.broadcast %cst_24 : f32 to vector<34x8xf32>
    %57 = arith.mulf %55, %56 : vector<34x8xf32>
    %58 = vector.extract_strided_slice %33 {offsets = [40, 0], sizes = [8, 34], strides = [1, 1]} : vector<96x34xf32> to vector<8x34xf32>
    %59 = vector.extract_strided_slice %33 {offsets = [72, 0], sizes = [8, 34], strides = [1, 1]} : vector<96x34xf32> to vector<8x34xf32>
    %cst_25 = arith.constant dense<0.000000e+00> : vector<34x34xf32>
    %60 = tpu.matmul %57, %58, %cst_25 {dimension_numbers = #tpu.dot_dimension_numbers<[1], [0], [0], [1], [0, 0, 1, 1], [], []>} : vector<34x8xf32>, vector<8x34xf32>, vector<34x34xf32> -> vector<34x34xf32>
    %61 = arith.addf %60, %34 : vector<34x34xf32>
    %cst_26 = arith.constant dense<0xFF800000> : vector<34xf32>
    %62 = vector.multi_reduction <maximumf>, %61, %cst_26 [1] : vector<34x34xf32> to vector<34xf32>
    %63 = vector.shape_cast %62 : vector<34xf32> to vector<34x1xf32>
    %64 = vector.broadcast %63 : vector<34x1xf32> to vector<34x34xf32>
    %65 = arith.subf %61, %64 : vector<34x34xf32>
    %66 = math.exp %65 : vector<34x34xf32>
    %cst_27 = arith.constant dense<0.000000e+00> : vector<34xf32>
    %67 = vector.multi_reduction <add>, %66, %cst_27 [1] : vector<34x34xf32> to vector<34xf32>
    %68 = vector.shape_cast %67 : vector<34xf32> to vector<34x1xf32>
    %69 = tpu.reciprocal %68 {approx = true} : vector<34x1xf32> -> vector<34x1xf32>
    %70 = vector.broadcast %69 : vector<34x1xf32> to vector<34x34xf32>
    %71 = arith.mulf %66, %70 : vector<34x34xf32>
    %cst_28 = arith.constant dense<0.000000e+00> : vector<34x8xf32>
    %72 = tpu.matmul %71, %59, %cst_28 {dimension_numbers = #tpu.dot_dimension_numbers<[1], [1], [0], [0], [0, 0, 1, 0], [], []>} : vector<34x34xf32>, vector<8x34xf32>, vector<34x8xf32> -> vector<34x8xf32>
    %73 = vector.extract_strided_slice %33 {offsets = [16, 0], sizes = [8, 34], strides = [1, 1]} : vector<96x34xf32> to vector<8x34xf32>
    %74 = tpu.transpose %73, [1, 0] : vector<8x34xf32> -> vector<34x8xf32>
    %cst_29 = arith.constant 0.353553385 : f32
    %75 = vector.broadcast %cst_29 : f32 to vector<34x8xf32>
    %76 = arith.mulf %74, %75 : vector<34x8xf32>
    %77 = vector.extract_strided_slice %33 {offsets = [48, 0], sizes = [8, 34], strides = [1, 1]} : vector<96x34xf32> to vector<8x34xf32>
    %78 = vector.extract_strided_slice %33 {offsets = [80, 0], sizes = [8, 34], strides = [1, 1]} : vector<96x34xf32> to vector<8x34xf32>
    %cst_30 = arith.constant dense<0.000000e+00> : vector<34x34xf32>
    %79 = tpu.matmul %76, %77, %cst_30 {dimension_numbers = #tpu.dot_dimension_numbers<[1], [0], [0], [1], [0, 0, 1, 1], [], []>} : vector<34x8xf32>, vector<8x34xf32>, vector<34x34xf32> -> vector<34x34xf32>
    %80 = arith.addf %79, %34 : vector<34x34xf32>
    %cst_31 = arith.constant dense<0xFF800000> : vector<34xf32>
    %81 = vector.multi_reduction <maximumf>, %80, %cst_31 [1] : vector<34x34xf32> to vector<34xf32>
    %82 = vector.shape_cast %81 : vector<34xf32> to vector<34x1xf32>
    %83 = vector.broadcast %82 : vector<34x1xf32> to vector<34x34xf32>
    %84 = arith.subf %80, %83 : vector<34x34xf32>
    %85 = math.exp %84 : vector<34x34xf32>
    %cst_32 = arith.constant dense<0.000000e+00> : vector<34xf32>
    %86 = vector.multi_reduction <add>, %85, %cst_32 [1] : vector<34x34xf32> to vector<34xf32>
    %87 = vector.shape_cast %86 : vector<34xf32> to vector<34x1xf32>
    %88 = tpu.reciprocal %87 {approx = true} : vector<34x1xf32> -> vector<34x1xf32>
    %89 = vector.broadcast %88 : vector<34x1xf32> to vector<34x34xf32>
    %90 = arith.mulf %85, %89 : vector<34x34xf32>
    %cst_33 = arith.constant dense<0.000000e+00> : vector<34x8xf32>
    %91 = tpu.matmul %90, %78, %cst_33 {dimension_numbers = #tpu.dot_dimension_numbers<[1], [1], [0], [0], [0, 0, 1, 0], [], []>} : vector<34x34xf32>, vector<8x34xf32>, vector<34x8xf32> -> vector<34x8xf32>
    %92 = vector.extract_strided_slice %33 {offsets = [24, 0], sizes = [8, 34], strides = [1, 1]} : vector<96x34xf32> to vector<8x34xf32>
    %93 = tpu.transpose %92, [1, 0] : vector<8x34xf32> -> vector<34x8xf32>
    %cst_34 = arith.constant 0.353553385 : f32
    %94 = vector.broadcast %cst_34 : f32 to vector<34x8xf32>
    %95 = arith.mulf %93, %94 : vector<34x8xf32>
    %96 = vector.extract_strided_slice %33 {offsets = [56, 0], sizes = [8, 34], strides = [1, 1]} : vector<96x34xf32> to vector<8x34xf32>
    %97 = vector.extract_strided_slice %33 {offsets = [88, 0], sizes = [8, 34], strides = [1, 1]} : vector<96x34xf32> to vector<8x34xf32>
    %cst_35 = arith.constant dense<0.000000e+00> : vector<34x34xf32>
    %98 = tpu.matmul %95, %96, %cst_35 {dimension_numbers = #tpu.dot_dimension_numbers<[1], [0], [0], [1], [0, 0, 1, 1], [], []>} : vector<34x8xf32>, vector<8x34xf32>, vector<34x34xf32> -> vector<34x34xf32>
    %99 = arith.addf %98, %34 : vector<34x34xf32>
    %cst_36 = arith.constant dense<0xFF800000> : vector<34xf32>
    %100 = vector.multi_reduction <maximumf>, %99, %cst_36 [1] : vector<34x34xf32> to vector<34xf32>
    %101 = vector.shape_cast %100 : vector<34xf32> to vector<34x1xf32>
    %102 = vector.broadcast %101 : vector<34x1xf32> to vector<34x34xf32>
    %103 = arith.subf %99, %102 : vector<34x34xf32>
    %104 = math.exp %103 : vector<34x34xf32>
    %cst_37 = arith.constant dense<0.000000e+00> : vector<34xf32>
    %105 = vector.multi_reduction <add>, %104, %cst_37 [1] : vector<34x34xf32> to vector<34xf32>
    %106 = vector.shape_cast %105 : vector<34xf32> to vector<34x1xf32>
    %107 = tpu.reciprocal %106 {approx = true} : vector<34x1xf32> -> vector<34x1xf32>
    %108 = vector.broadcast %107 : vector<34x1xf32> to vector<34x34xf32>
    %109 = arith.mulf %104, %108 : vector<34x34xf32>
    %cst_38 = arith.constant dense<0.000000e+00> : vector<34x8xf32>
    %110 = tpu.matmul %109, %97, %cst_38 {dimension_numbers = #tpu.dot_dimension_numbers<[1], [1], [0], [0], [0, 0, 1, 0], [], []>} : vector<34x34xf32>, vector<8x34xf32>, vector<34x8xf32> -> vector<34x8xf32>
    %111 = tpu.concatenate %53, %72, %91, %110 in 1 : vector<34x8xf32>, vector<34x8xf32>, vector<34x8xf32>, vector<34x8xf32> -> vector<34x32xf32>
    %c0_39 = arith.constant 0 : index
    %c0_40 = arith.constant 0 : index
    %c0_41 = arith.constant 0 : index
    %112 = vector.load %arg6[%c0_39, %c0_40, %c0_41] : memref<1x32x32xf32, #tpu.memory_space<vmem>>, vector<1x32x32xf32>
    %113 = vector.shape_cast %112 : vector<1x32x32xf32> to vector<32x32xf32>
    %cst_42 = arith.constant dense<0.000000e+00> : vector<34x32xf32>
    %114 = tpu.matmul %111, %113, %cst_42 {dimension_numbers = #tpu.dot_dimension_numbers<[1], [0], [0], [1], [0, 0, 1, 1], [], []>} : vector<34x32xf32>, vector<32x32xf32>, vector<34x32xf32> -> vector<34x32xf32>
    %c0_43 = arith.constant 0 : index
    %c0_44 = arith.constant 0 : index
    %c0_45 = arith.constant 0 : index
    %115 = vector.load %arg7[%c0_43, %c0_44, %c0_45] : memref<1x1x32xf32, #tpu.memory_space<vmem>>, vector<1x1x32xf32>
    %116 = vector.shape_cast %115 : vector<1x1x32xf32> to vector<1x32xf32>
    %117 = vector.broadcast %116 : vector<1x32xf32> to vector<34x32xf32>
    %118 = arith.addf %114, %117 : vector<34x32xf32>
    %119 = arith.addf %118, %4 : vector<34x32xf32>
    %c0_46 = arith.constant 0 : index
    %c0_47 = arith.constant 0 : index
    %c0_48 = arith.constant 0 : index
    %120 = vector.load %arg8[%c0_46, %c0_47, %c0_48] : memref<1x1x32xf32, #tpu.memory_space<vmem>>, vector<1x1x32xf32>
    %121 = vector.shape_cast %120 : vector<1x1x32xf32> to vector<1x32xf32>
    %c0_49 = arith.constant 0 : index
    %c0_50 = arith.constant 0 : index
    %c0_51 = arith.constant 0 : index
    %122 = vector.load %arg9[%c0_49, %c0_50, %c0_51] : memref<1x1x32xf32, #tpu.memory_space<vmem>>, vector<1x1x32xf32>
    %123 = vector.shape_cast %122 : vector<1x1x32xf32> to vector<1x32xf32>
    %cst_52 = arith.constant dense<0.000000e+00> : vector<34xf32>
    %124 = vector.multi_reduction <add>, %119, %cst_52 [1] : vector<34x32xf32> to vector<34xf32>
    %125 = vector.shape_cast %124 : vector<34xf32> to vector<34x1xf32>
    %cst_53 = arith.constant 3.200000e+01 : f32
    %126 = vector.broadcast %cst_53 : f32 to vector<34x1xf32>
    %127 = arith.divf %125, %126 : vector<34x1xf32>
    %128 = vector.broadcast %127 : vector<34x1xf32> to vector<34x32xf32>
    %129 = arith.subf %119, %128 : vector<34x32xf32>
    %130 = arith.mulf %129, %129 : vector<34x32xf32>
    %cst_54 = arith.constant dense<0.000000e+00> : vector<34xf32>
    %131 = vector.multi_reduction <add>, %130, %cst_54 [1] : vector<34x32xf32> to vector<34xf32>
    %132 = vector.shape_cast %131 : vector<34xf32> to vector<34x1xf32>
    %cst_55 = arith.constant 3.200000e+01 : f32
    %133 = vector.broadcast %cst_55 : f32 to vector<34x1xf32>
    %134 = arith.divf %132, %133 : vector<34x1xf32>
    %135 = vector.broadcast %127 : vector<34x1xf32> to vector<34x32xf32>
    %136 = arith.subf %119, %135 : vector<34x32xf32>
    %cst_56 = arith.constant 9.99999974E-6 : f32
    %137 = vector.broadcast %cst_56 : f32 to vector<34x1xf32>
    %138 = arith.addf %134, %137 : vector<34x1xf32>
    %139 = math.rsqrt %138 : vector<34x1xf32>
    %140 = vector.broadcast %139 : vector<34x1xf32> to vector<34x32xf32>
    %141 = arith.mulf %136, %140 : vector<34x32xf32>
    %142 = vector.broadcast %121 : vector<1x32xf32> to vector<34x32xf32>
    %143 = arith.mulf %141, %142 : vector<34x32xf32>
    %144 = vector.broadcast %123 : vector<1x32xf32> to vector<34x32xf32>
    %145 = arith.addf %143, %144 : vector<34x32xf32>
    %c0_57 = arith.constant 0 : index
    %c0_58 = arith.constant 0 : index
    %c0_59 = arith.constant 0 : index
    %146 = vector.load %arg10[%c0_57, %c0_58, %c0_59] : memref<1x32x64xf32, #tpu.memory_space<vmem>>, vector<1x32x64xf32>
    %147 = vector.shape_cast %146 : vector<1x32x64xf32> to vector<32x64xf32>
    %cst_60 = arith.constant dense<0.000000e+00> : vector<34x64xf32>
    %148 = tpu.matmul %145, %147, %cst_60 {dimension_numbers = #tpu.dot_dimension_numbers<[1], [0], [0], [1], [0, 0, 1, 1], [], []>} : vector<34x32xf32>, vector<32x64xf32>, vector<34x64xf32> -> vector<34x64xf32>
    %c0_61 = arith.constant 0 : index
    %c0_62 = arith.constant 0 : index
    %c0_63 = arith.constant 0 : index
    %149 = vector.load %arg11[%c0_61, %c0_62, %c0_63] : memref<1x1x64xf32, #tpu.memory_space<vmem>>, vector<1x1x64xf32>
    %150 = vector.shape_cast %149 : vector<1x1x64xf32> to vector<1x64xf32>
    %151 = vector.broadcast %150 : vector<1x64xf32> to vector<34x64xf32>
    %152 = arith.addf %148, %151 : vector<34x64xf32>
    %cst_64 = arith.constant 3.000000e+00 : f32
    %153 = vector.broadcast %cst_64 : f32 to vector<34x64xf32>
    %154 = arith.addf %152, %153 : vector<34x64xf32>
    %cst_65 = arith.constant 0.000000e+00 : f32
    %cst_66 = arith.constant 6.000000e+00 : f32
    %155 = vector.broadcast %cst_65 : f32 to vector<34x64xf32>
    %156 = arith.maximumf %155, %154 : vector<34x64xf32>
    %157 = vector.broadcast %cst_66 : f32 to vector<34x64xf32>
    %158 = arith.minimumf %157, %156 : vector<34x64xf32>
    %159 = arith.mulf %152, %158 : vector<34x64xf32>
    %cst_67 = arith.constant 0.166666672 : f32
    %160 = vector.broadcast %cst_67 : f32 to vector<34x64xf32>
    %161 = arith.mulf %159, %160 : vector<34x64xf32>
    %c0_68 = arith.constant 0 : index
    %c0_69 = arith.constant 0 : index
    %162 = vector.load %arg18[%c0_68, %c0_69] : memref<306x34xf32, #tpu.memory_space<vmem>>, vector<306x34xf32>
    %cst_70 = arith.constant dense<0.000000e+00> : vector<306x64xf32>
    %163 = tpu.matmul %162, %161, %cst_70 {dimension_numbers = #tpu.dot_dimension_numbers<[1], [0], [0], [1], [0, 0, 1, 1], [], []>} : vector<306x34xf32>, vector<34x64xf32>, vector<306x64xf32> -> vector<306x64xf32>
    %c0_71 = arith.constant 0 : index
    %c0_72 = arith.constant 0 : index
    %c0_73 = arith.constant 0 : index
    %164 = vector.load %arg12[%c0_71, %c0_72, %c0_73] : memref<1x9x64xf32, #tpu.memory_space<vmem>>, vector<1x9x64xf32>
    %165 = vector.shape_cast %164 : vector<1x9x64xf32> to vector<9x64xf32>
    %c0_74 = arith.constant 0 : index
    %c0_75 = arith.constant 0 : index
    %c0_76 = arith.constant 0 : index
    %166 = vector.load %arg13[%c0_74, %c0_75, %c0_76] : memref<1x1x64xf32, #tpu.memory_space<vmem>>, vector<1x1x64xf32>
    %167 = vector.shape_cast %166 : vector<1x1x64xf32> to vector<1x64xf32>
    %168 = vector.shape_cast %167 : vector<1x64xf32> to vector<1x64xf32>
    %169 = vector.broadcast %168 : vector<1x64xf32> to vector<34x64xf32>
    %170 = vector.extract_strided_slice %163 {offsets = [0, 0], sizes = [34, 64], strides = [1, 1]} : vector<306x64xf32> to vector<34x64xf32>
    %171 = vector.extract_strided_slice %165 {offsets = [0, 0], sizes = [1, 64], strides = [1, 1]} : vector<9x64xf32> to vector<1x64xf32>
    %172 = vector.broadcast %171 : vector<1x64xf32> to vector<34x64xf32>
    %173 = arith.mulf %170, %172 : vector<34x64xf32>
    %174 = arith.addf %169, %173 : vector<34x64xf32>
    %175 = vector.extract_strided_slice %163 {offsets = [34, 0], sizes = [34, 64], strides = [1, 1]} : vector<306x64xf32> to vector<34x64xf32>
    %176 = vector.extract_strided_slice %165 {offsets = [1, 0], sizes = [1, 64], strides = [1, 1]} : vector<9x64xf32> to vector<1x64xf32>
    %177 = vector.broadcast %176 : vector<1x64xf32> to vector<34x64xf32>
    %178 = arith.mulf %175, %177 : vector<34x64xf32>
    %179 = arith.addf %174, %178 : vector<34x64xf32>
    %180 = vector.extract_strided_slice %163 {offsets = [68, 0], sizes = [34, 64], strides = [1, 1]} : vector<306x64xf32> to vector<34x64xf32>
    %181 = vector.extract_strided_slice %165 {offsets = [2, 0], sizes = [1, 64], strides = [1, 1]} : vector<9x64xf32> to vector<1x64xf32>
    %182 = vector.broadcast %181 : vector<1x64xf32> to vector<34x64xf32>
    %183 = arith.mulf %180, %182 : vector<34x64xf32>
    %184 = arith.addf %179, %183 : vector<34x64xf32>
    %185 = vector.extract_strided_slice %163 {offsets = [102, 0], sizes = [34, 64], strides = [1, 1]} : vector<306x64xf32> to vector<34x64xf32>
    %186 = vector.extract_strided_slice %165 {offsets = [3, 0], sizes = [1, 64], strides = [1, 1]} : vector<9x64xf32> to vector<1x64xf32>
    %187 = vector.broadcast %186 : vector<1x64xf32> to vector<34x64xf32>
    %188 = arith.mulf %185, %187 : vector<34x64xf32>
    %189 = arith.addf %184, %188 : vector<34x64xf32>
    %190 = vector.extract_strided_slice %163 {offsets = [136, 0], sizes = [34, 64], strides = [1, 1]} : vector<306x64xf32> to vector<34x64xf32>
    %191 = vector.extract_strided_slice %165 {offsets = [4, 0], sizes = [1, 64], strides = [1, 1]} : vector<9x64xf32> to vector<1x64xf32>
    %192 = vector.broadcast %191 : vector<1x64xf32> to vector<34x64xf32>
    %193 = arith.mulf %190, %192 : vector<34x64xf32>
    %194 = arith.addf %189, %193 : vector<34x64xf32>
    %195 = vector.extract_strided_slice %163 {offsets = [170, 0], sizes = [34, 64], strides = [1, 1]} : vector<306x64xf32> to vector<34x64xf32>
    %196 = vector.extract_strided_slice %165 {offsets = [5, 0], sizes = [1, 64], strides = [1, 1]} : vector<9x64xf32> to vector<1x64xf32>
    %197 = vector.broadcast %196 : vector<1x64xf32> to vector<34x64xf32>
    %198 = arith.mulf %195, %197 : vector<34x64xf32>
    %199 = arith.addf %194, %198 : vector<34x64xf32>
    %200 = vector.extract_strided_slice %163 {offsets = [204, 0], sizes = [34, 64], strides = [1, 1]} : vector<306x64xf32> to vector<34x64xf32>
    %201 = vector.extract_strided_slice %165 {offsets = [6, 0], sizes = [1, 64], strides = [1, 1]} : vector<9x64xf32> to vector<1x64xf32>
    %202 = vector.broadcast %201 : vector<1x64xf32> to vector<34x64xf32>
    %203 = arith.mulf %200, %202 : vector<34x64xf32>
    %204 = arith.addf %199, %203 : vector<34x64xf32>
    %205 = vector.extract_strided_slice %163 {offsets = [238, 0], sizes = [34, 64], strides = [1, 1]} : vector<306x64xf32> to vector<34x64xf32>
    %206 = vector.extract_strided_slice %165 {offsets = [7, 0], sizes = [1, 64], strides = [1, 1]} : vector<9x64xf32> to vector<1x64xf32>
    %207 = vector.broadcast %206 : vector<1x64xf32> to vector<34x64xf32>
    %208 = arith.mulf %205, %207 : vector<34x64xf32>
    %209 = arith.addf %204, %208 : vector<34x64xf32>
    %210 = vector.extract_strided_slice %163 {offsets = [272, 0], sizes = [34, 64], strides = [1, 1]} : vector<306x64xf32> to vector<34x64xf32>
    %211 = vector.extract_strided_slice %165 {offsets = [8, 0], sizes = [1, 64], strides = [1, 1]} : vector<9x64xf32> to vector<1x64xf32>
    %212 = vector.broadcast %211 : vector<1x64xf32> to vector<34x64xf32>
    %213 = arith.mulf %210, %212 : vector<34x64xf32>
    %214 = arith.addf %209, %213 : vector<34x64xf32>
    %c0_77 = arith.constant 0 : index
    %c0_78 = arith.constant 0 : index
    %c0_79 = arith.constant 0 : index
    %215 = vector.load %arg14[%c0_77, %c0_78, %c0_79] : memref<1x64x64xf32, #tpu.memory_space<vmem>>, vector<1x64x64xf32>
    %216 = vector.shape_cast %215 : vector<1x64x64xf32> to vector<64x64xf32>
    %cst_80 = arith.constant dense<0.000000e+00> : vector<34x64xf32>
    %217 = tpu.matmul %214, %216, %cst_80 {dimension_numbers = #tpu.dot_dimension_numbers<[1], [0], [0], [1], [0, 0, 1, 1], [], []>} : vector<34x64xf32>, vector<64x64xf32>, vector<34x64xf32> -> vector<34x64xf32>
    %c0_81 = arith.constant 0 : index
    %c0_82 = arith.constant 0 : index
    %c0_83 = arith.constant 0 : index
    %218 = vector.load %arg15[%c0_81, %c0_82, %c0_83] : memref<1x1x64xf32, #tpu.memory_space<vmem>>, vector<1x1x64xf32>
    %219 = vector.shape_cast %218 : vector<1x1x64xf32> to vector<1x64xf32>
    %220 = vector.broadcast %219 : vector<1x64xf32> to vector<34x64xf32>
    %221 = arith.addf %217, %220 : vector<34x64xf32>
    %cst_84 = arith.constant 3.000000e+00 : f32
    %222 = vector.broadcast %cst_84 : f32 to vector<34x64xf32>
    %223 = arith.addf %221, %222 : vector<34x64xf32>
    %cst_85 = arith.constant 0.000000e+00 : f32
    %cst_86 = arith.constant 6.000000e+00 : f32
    %224 = vector.broadcast %cst_85 : f32 to vector<34x64xf32>
    %225 = arith.maximumf %224, %223 : vector<34x64xf32>
    %226 = vector.broadcast %cst_86 : f32 to vector<34x64xf32>
    %227 = arith.minimumf %226, %225 : vector<34x64xf32>
    %228 = arith.mulf %221, %227 : vector<34x64xf32>
    %cst_87 = arith.constant 0.166666672 : f32
    %229 = vector.broadcast %cst_87 : f32 to vector<34x64xf32>
    %230 = arith.mulf %228, %229 : vector<34x64xf32>
    %c0_88 = arith.constant 0 : index
    %c0_89 = arith.constant 0 : index
    %c0_90 = arith.constant 0 : index
    %231 = vector.load %arg16[%c0_88, %c0_89, %c0_90] : memref<1x64x32xf32, #tpu.memory_space<vmem>>, vector<1x64x32xf32>
    %232 = vector.shape_cast %231 : vector<1x64x32xf32> to vector<64x32xf32>
    %cst_91 = arith.constant dense<0.000000e+00> : vector<34x32xf32>
    %233 = tpu.matmul %230, %232, %cst_91 {dimension_numbers = #tpu.dot_dimension_numbers<[1], [0], [0], [1], [0, 0, 1, 1], [], []>} : vector<34x64xf32>, vector<64x32xf32>, vector<34x32xf32> -> vector<34x32xf32>
    %c0_92 = arith.constant 0 : index
    %c0_93 = arith.constant 0 : index
    %c0_94 = arith.constant 0 : index
    %234 = vector.load %arg17[%c0_92, %c0_93, %c0_94] : memref<1x1x32xf32, #tpu.memory_space<vmem>>, vector<1x1x32xf32>
    %235 = vector.shape_cast %234 : vector<1x1x32xf32> to vector<1x32xf32>
    %236 = vector.broadcast %235 : vector<1x32xf32> to vector<34x32xf32>
    %237 = arith.addf %233, %236 : vector<34x32xf32>
    %c0_95 = arith.constant 0 : index
    %c0_96 = arith.constant 0 : index
    %238 = vector.load %arg20[%c0_95, %c0_96] : memref<34x1xf32, #tpu.memory_space<vmem>>, vector<34x1xf32>
    %239 = vector.broadcast %238 : vector<34x1xf32> to vector<34x32xf32>
    %240 = arith.mulf %237, %239 : vector<34x32xf32>
    %241 = arith.addf %119, %240 : vector<34x32xf32>
    %c0_97 = arith.constant 0 : index
    %c0_98 = arith.constant 0 : index
    %c0_99 = arith.constant 0 : index
    %242 = vector.load %arg21[%c0_97, %c0_98, %c0_99] : memref<1x34x32xf32, #tpu.memory_space<vmem>>, vector<1x34x32xf32>
    %243 = vector.shape_cast %242 : vector<1x34x32xf32> to vector<34x32xf32>
    %244 = vector.shape_cast %241 : vector<34x32xf32> to vector<1x34x32xf32>
    tpu.vector_store %arg21[%c0_97, %c0_98, %c0_99], %244 {strides = array<i32>} : memref<1x34x32xf32, #tpu.memory_space<vmem>>, vector<1x34x32xf32>,
    return
  }
  func.func @transform_0(%arg0: i32, %arg1: i32) -> (i32, i32, i32) {
    %c0_i32 = arith.constant 0 : i32
    %c0_i32_0 = arith.constant 0 : i32
    %c0_i32_1 = arith.constant 0 : i32
    return %arg0, %c0_i32, %c0_i32_0 : i32, i32, i32
  }
  func.func @transform_1(%arg0: i32, %arg1: i32) -> (i32, i32, i32) {
    %c0_i32 = arith.constant 0 : i32
    %c0_i32_0 = arith.constant 0 : i32
    %c0_i32_1 = arith.constant 0 : i32
    return %arg1, %c0_i32, %c0_i32_0 : i32, i32, i32
  }
  func.func @transform_2(%arg0: i32, %arg1: i32) -> (i32, i32, i32) {
    %c0_i32 = arith.constant 0 : i32
    %c0_i32_0 = arith.constant 0 : i32
    %c0_i32_1 = arith.constant 0 : i32
    return %arg1, %c0_i32, %c0_i32_0 : i32, i32, i32
  }
  func.func @transform_3(%arg0: i32, %arg1: i32) -> (i32, i32, i32) {
    %c0_i32 = arith.constant 0 : i32
    %c0_i32_0 = arith.constant 0 : i32
    %c0_i32_1 = arith.constant 0 : i32
    return %arg1, %c0_i32, %c0_i32_0 : i32, i32, i32
  }
  func.func @transform_4(%arg0: i32, %arg1: i32) -> (i32, i32, i32) {
    %c0_i32 = arith.constant 0 : i32
    %c0_i32_0 = arith.constant 0 : i32
    %c0_i32_1 = arith.constant 0 : i32
    return %arg1, %c0_i32, %c0_i32_0 : i32, i32, i32
  }
  func.func @transform_5(%arg0: i32, %arg1: i32) -> (i32, i32, i32) {
    %c0_i32 = arith.constant 0 : i32
    %c0_i32_0 = arith.constant 0 : i32
    %c0_i32_1 = arith.constant 0 : i32
    return %arg1, %c0_i32, %c0_i32_0 : i32, i32, i32
  }
  func.func @transform_6(%arg0: i32, %arg1: i32) -> (i32, i32, i32) {
    %c0_i32 = arith.constant 0 : i32
    %c0_i32_0 = arith.constant 0 : i32
    %c0_i32_1 = arith.constant 0 : i32
    return %arg1, %c0_i32, %c0_i32_0 : i32, i32, i32
  }
  func.func @transform_7(%arg0: i32, %arg1: i32) -> (i32, i32, i32) {
    %c0_i32 = arith.constant 0 : i32
    %c0_i32_0 = arith.constant 0 : i32
    %c0_i32_1 = arith.constant 0 : i32
    return %arg1, %c0_i32, %c0_i32_0 : i32, i32, i32
  }
  func.func @transform_8(%arg0: i32, %arg1: i32) -> (i32, i32, i32) {
    %c0_i32 = arith.constant 0 : i32
    %c0_i32_0 = arith.constant 0 : i32
    %c0_i32_1 = arith.constant 0 : i32
    return %arg1, %c0_i32, %c0_i32_0 : i32, i32, i32
  }
  func.func @transform_9(%arg0: i32, %arg1: i32) -> (i32, i32, i32) {
    %c0_i32 = arith.constant 0 : i32
    %c0_i32_0 = arith.constant 0 : i32
    %c0_i32_1 = arith.constant 0 : i32
    return %arg1, %c0_i32, %c0_i32_0 : i32, i32, i32
  }
  func.func @transform_10(%arg0: i32, %arg1: i32) -> (i32, i32, i32) {
    %c0_i32 = arith.constant 0 : i32
    %c0_i32_0 = arith.constant 0 : i32
    %c0_i32_1 = arith.constant 0 : i32
    return %arg1, %c0_i32, %c0_i32_0 : i32, i32, i32
  }
  func.func @transform_11(%arg0: i32, %arg1: i32) -> (i32, i32, i32) {
    %c0_i32 = arith.constant 0 : i32
    %c0_i32_0 = arith.constant 0 : i32
    %c0_i32_1 = arith.constant 0 : i32
    return %arg1, %c0_i32, %c0_i32_0 : i32, i32, i32
  }
  func.func @transform_12(%arg0: i32, %arg1: i32) -> (i32, i32, i32) {
    %c0_i32 = arith.constant 0 : i32
    %c0_i32_0 = arith.constant 0 : i32
    %c0_i32_1 = arith.constant 0 : i32
    return %arg1, %c0_i32, %c0_i32_0 : i32, i32, i32
  }
  func.func @transform_13(%arg0: i32, %arg1: i32) -> (i32, i32, i32) {
    %c0_i32 = arith.constant 0 : i32
    %c0_i32_0 = arith.constant 0 : i32
    %c0_i32_1 = arith.constant 0 : i32
    return %arg1, %c0_i32, %c0_i32_0 : i32, i32, i32
  }
  func.func @transform_14(%arg0: i32, %arg1: i32) -> (i32, i32, i32) {
    %c0_i32 = arith.constant 0 : i32
    %c0_i32_0 = arith.constant 0 : i32
    %c0_i32_1 = arith.constant 0 : i32
    return %arg1, %c0_i32, %c0_i32_0 : i32, i32, i32
  }
  func.func @transform_15(%arg0: i32, %arg1: i32) -> (i32, i32, i32) {
    %c0_i32 = arith.constant 0 : i32
    %c0_i32_0 = arith.constant 0 : i32
    %c0_i32_1 = arith.constant 0 : i32
    return %arg1, %c0_i32, %c0_i32_0 : i32, i32, i32
  }
  func.func @transform_16(%arg0: i32, %arg1: i32) -> (i32, i32) {
    %c0_i32 = arith.constant 0 : i32
    %c0_i32_0 = arith.constant 0 : i32
    %c0_i32_1 = arith.constant 0 : i32
    return %c0_i32, %c0_i32_0 : i32, i32
  }
  func.func @transform_17(%arg0: i32, %arg1: i32) -> (i32, i32) {
    %c0_i32 = arith.constant 0 : i32
    %c0_i32_0 = arith.constant 0 : i32
    %c0_i32_1 = arith.constant 0 : i32
    return %c0_i32, %c0_i32_0 : i32, i32
  }
  func.func @transform_18(%arg0: i32, %arg1: i32) -> (i32, i32) {
    %c0_i32 = arith.constant 0 : i32
    %c0_i32_0 = arith.constant 0 : i32
    %c0_i32_1 = arith.constant 0 : i32
    return %c0_i32, %c0_i32_0 : i32, i32
  }
  func.func @transform_19(%arg0: i32, %arg1: i32) -> (i32, i32, i32) {
    %c0_i32 = arith.constant 0 : i32
    %c0_i32_0 = arith.constant 0 : i32
    %c0_i32_1 = arith.constant 0 : i32
    return %arg0, %c0_i32, %c0_i32_0 : i32, i32, i32
  }
}

</mosaic_0001>

<bundles_post_ra>
// kernel: transformer_forward.1
= control target key start
LH: loop header
LB: loop body
LE: loop exit
PB: predicated region body
PF: predicated region fallthrough
CT: control target
= control target key end

     0   :  { %s3640_s30 = smov 0   ;;  %s3642_s20 = smov 0   ;;  %s4538_s0 = inlined_call_operand.vmem [shape: f32[2,34,32], index: 0, kind: input, shape index: {}]   ;;  %s4539_s1 = inlined_call_operand.vmem [shape: f32[2,1,32], index: 1, kind: input, shape index: {}]   ;;  %s4540_s2 = inlined_call_operand.vmem [shape: f32[2,1,32], index: 2, kind: input, shape index: {}]   ;;  %s4541_s3 = inlined_call_operand.vmem [shape: f32[2,96,32], index: 3, kind: input, shape index: {}]   ;;  %s4542_s4 = inlined_call_operand.vmem [shape: f32[2,32,32], index: 4, kind: input, shape index: {}]   ;;  %s4543_s5 = inlined_call_operand.vmem [shape: f32[2,1,32], index: 5, kind: input, shape index: {}]   ;;  %s4544_s6 = inlined_call_operand.vmem [shape: f32[2,1,32], index: 6, kind: input, shape index: {}]   ;;  %s4545_s7 = inlined_call_operand.vmem [shape: f32[2,1,32], index: 7, kind: input, shape index: {}]   ;;  %s4546_s8 = inlined_call_operand.vmem [shape: f32[2,32,64], index: 8, kind: input, shape index: {}]   ;;  %s4547_s9 = inlined_call_operand.vmem [shape: f32[2,1,64], index: 9, kind: input, shape index: {}]   ;;  %s4548_s10 = inlined_call_operand.vmem [shape: f32[2,9,64], index: 10, kind: input, shape index: {}]   ;;  %s4549_s11 = inlined_call_operand.vmem [shape: f32[2,1,64], index: 11, kind: input, shape index: {}]   ;;  %s4550_s12 = inlined_call_operand.vmem [shape: f32[2,64,64], index: 12, kind: input, shape index: {}]   ;;  %s4551_s13 = inlined_call_operand.vmem [shape: f32[2,1,64], index: 13, kind: input, shape index: {}]   ;;  %s4552_s14 = inlined_call_operand.vmem [shape: f32[2,64,32], index: 14, kind: input, shape index: {}]   ;;  %s4553_s15 = inlined_call_operand.vmem [shape: f32[2,1,32], index: 15, kind: input, shape index: {}]   ;;  %s4554_s16 = inlined_call_operand.vmem [shape: f32[306,34], index: 16, kind: input, shape index: {}]   ;;  %s4555_s17 = inlined_call_operand.vmem [shape: f32[34,34], index: 17, kind: input, shape index: {}]   ;;  %s4556_s18 = inlined_call_operand.vmem [shape: f32[34,1], index: 18, kind: input, shape index: {}]   ;;  %s4557_s19 = inlined_call_operand.vmem [shape: f32[2,34,32], index: 19, kind: output, shape index: {}]  }
   0x1   :  { %4566 = sst [smem:[#allocation9_spill]] %s4538_s0  ;;  %s3638_s0 = smov 0  }
   0x2   :  { %4567 = sst [smem:[#allocation10_spill]] %s4539_s1  ;;  %s3644_s21 = smov 0  }
   0x3   :  { %4568 = sst [smem:[#allocation11_spill]] %s4540_s2  ;;  %s3646_s1 = smov 0  }
   0x4   :  { %4569 = sst [smem:[#allocation12_spill]] %s4541_s3 }
   0x5   :  { %4570 = sst [smem:[#allocation13_spill]] %s4542_s4 }
   0x6   :  { %4571 = sst [smem:[#allocation14_spill]] %s4546_s8 }
   0x7   :  { %4572 = sst [smem:[#allocation15_spill]] %s4548_s10 }
   0x8   :  { %4573 = sst [smem:[#allocation16_spill]] %s4549_s11 }
   0x9   :  { %4574 = sst [smem:[#allocation17_spill]] %s4552_s14 }
   0xa   :  { %4575 = sst [smem:[#allocation18_spill]] %s4553_s15 }
   0xb   :  { %4576 = sst [smem:[#allocation19_spill]] %s4554_s16 }
   0xc   :  { %4577 = sst [smem:[#allocation20_spill]] %s4555_s17 }
   0xd   :  { %4578 = sst [smem:[#allocation21_spill]] %s4556_s18 }
   0xe   :  { %4579 = sst [smem:[#allocation22_spill]] %s4557_s19 }
   0xf LB: > { %4580 = sst [smem:[#allocation2_spill]] %s3515_s0  ;;  %s38_s22 = sadd.s32 1, %s3523_s20  ;;  %s3531_s1 = sphi %s3646_s1, %s29_s1   ;;  %s3527_s21 = sphi %s3644_s21, %s4621_s21   ;;  %s3523_s20 = sphi %s3642_s20, %s4620_s20   ;;  %s3519_s30 = sphi %s3640_s30, %s4619_s30   ;;  %s3515_s0 = sphi %s3638_s0, %s4618_s0  }
  0x10   : > { %4581 = sst [smem:[#allocation3_spill]] %s3523_s20  ;;  %s41_s2 = sadd.s32 1, %s3527_s21 }
  0x11   : > { %4582 = sst [smem:[#allocation4_spill]] %s3527_s21  ;;  %p39_p0 = scmp.ge.s32.totalorder %s38_s22, 2 }
  0x12   : > { %4583 = sst [smem:[#allocation5_spill]] %s3531_s1  ;;  %p3171_p1 = scmp.ge.s32.totalorder %s3531_s1, 1 }
  0x13   : > { %p681_p2 = scmp.lt.s32.totalorder %s3531_s1, 5  ;;  %s4623_s22 = smov (%p39_p0, %s38_s22), 0 }
  0x14   : > { %4584 = sst [smem:[#allocation6_spill]] %s4623_s22  ;;  %s4625_s2 = smov (!%p39_p0, %s41_s2), %s3527_s21 }
  0x15   : > { %p682_p3 = pnand %p3171_p1, %p681_p2  ;;  %p43_p4 = scmp.ge.s32.totalorder %s4625_s2, 2 }
  0x17   : > { %s4627_s2 = smov (%p43_p4, %s4625_s2), 0  ;;  %685 = sbr.rel (%p682_p3) target bundleno = 3537 (0xdd1), region = 96 }
  0x18   : > { %4585 = sst [smem:[#allocation7_spill]] %s4627_s2 }
  0x1c   : > { %p794_p5 = scmp.lt.s32.totalorder %s3519_s30, 1  ;;  %p799_p6 = scmp.lt.s32.totalorder %s3515_s0, 1 }
  0x1d   : > { %s4588_s1 = sld [smem:[#allocation9_spill]] }
  0x1e   : > { %s4629_s30 = smov (!%p794_p5, %s3519_s30), 1  ;;  %s4589_s3 = sld [smem:[#allocation12_spill]] }
  0x1f   : > { %s3672_s23 = scalar_select %p799_p6, %s3515_s0, 1 }
  0x20   : > { %s3325_s24 = smul.u32 40, %s4629_s30  ;;  %s4590_s4 = sld [smem:[#allocation13_spill]] }
  0x21   : > { %s3326_s16 = smul.u32 96, %s3672_s23  ;;  %s3309_s17 = sshll.u32 %s3672_s23, 5 }
  0x22   : > { %s4591_s8 = sld [smem:[#allocation14_spill]]  ;;  %s3311_s27 = sshll.u32 %s3672_s23, 4 }
  0x23   : > { %s798_s18 = scalar_lea.vmem %s4588_s1, %s3325_s24  ;;  %s4593_s10 = sld [smem:[#allocation15_spill]] }
  0x24   : > { %s3694_s26 = scalar_lea.vmem %s4589_s3, %s3326_s16  ;;  %s3312_s22 = sshll.u32 %s3672_s23, 6 }
  0x25   : > { %s847_s15 = scalar_lea.vmem %s4551_s13, %s3672_s23  ;;  %s4596_s20 = sld [smem:[#allocation18_spill]] }
  0x26   : > { %s3699_s2 = scalar_lea.vmem %s4590_s4, %s3309_s17  ;;  %s4597_s11 = sld [smem:[#allocation22_spill]] }
  0x27   : > { %s4598_s14 = sld [smem:[#allocation2_spill]] }
  0x28   : > { %s3712_s30 = scalar_lea.vmem %s4591_s8, %s3309_s17  ;;  %s3732_s17 = scalar_lea.vmem %s4550_s12, %s3312_s22 }
  0x29   : > { %s3726_s1 = scalar_lea.vmem %s4593_s10, %s3311_s27  ;;  %s4595_s8 = sld [smem:[#allocation17_spill]] }
  0x2a   : > { %4594 = sst [smem:[#allocation8_spill]] %s3726_s1 }
  0x2b   : > { %s855_s27 = scalar_lea.vmem %s4596_s20, %s3672_s23 }
  0x2c   : > { %s3750_s1 = scalar_lea.vmem %s4597_s11, %s3325_s24 }
  0x2d   : > { %p3185_p7 = scmp.ne.s32.totalorder %s4598_s14, 0 }
  0x2f   : > { %s3741_s3 = scalar_lea.vmem %s4595_s8, %s3312_s22  ;;  %864 = sbr.rel (%p3185_p7) target bundleno = 58 (0x3a), region = 100 }
  0x34   : > { %v865_v0 = vld [vmem:[%s798_s18] sm:$0xff]  ;;  %vm870_vm0 = vcmask 261120   ;;  %v866_v1 = vld [vmem:[%s798_s18 + $0x8] sm:$0xff]  ;;  %v867_v2 = vld [vmem:[%s798_s18 + $0x10] sm:$0xff]  ;;  %vm875_vm1 = vcmask 254976  }
  0x35   : > { %871 = vst.msk [vmem:[%s3750_s1] sm:$0xff] %vm870_vm0, %v865_v0  ;;  %v868_v3 = vld [vmem:[%s798_s18 + $0x18] sm:$0xff]  ;;  %v869_v4 = vld [vmem:[%s798_s18 + $0x20] sm:$0x3] }
  0x36   : > { %872 = vst.msk [vmem:[%s3750_s1 + $0x8] sm:$0xff] %vm870_vm0, %v866_v1 }
  0x37   : > { %873 = vst.msk [vmem:[%s3750_s1 + $0x10] sm:$0xff] %vm870_vm0, %v867_v2 }
  0x38   : > { %874 = vst.msk [vmem:[%s3750_s1 + $0x18] sm:$0xff] %vm870_vm0, %v868_v3 }
  0x39   : > { %876 = vst.msk [vmem:[%s3750_s1 + $0x20] sm:$0x3] %vm875_vm1, %v869_v4 }
  0x3a PF: > { %vm897_vm2 = vcmask 254976   ;;  %vm884_vm3 = vcmask 261120   ;;  %v3533_v15 = vmov 32.0   ;;  %s4599_s10 = sld [smem:[#allocation10_spill]]  ;;  %s3535_s18 = smov 16  }
  0x3b   : > { %3386 = vrcp.f32 %v3533_v15  ;;  %s4601_s25 = sld [smem:[#allocation11_spill]]  ;;  %s3536_s24 = smov 24  }
  0x3c   : > { %v877_v9 = vld [vmem:[%s3750_s1] sm:$0xff]  ;;  %s4605_s0 = sld [smem:[#allocation20_spill]]  ;;  %s4609_s20 = scalar_lea.vmem %s4545_s7, %s3672_s23 }
  0x3d   : > { %v885_v11 = vsel %vm884_vm3, %v877_v9, 0.0  ;;  %v878_v12 = vld [vmem:[%s3750_s1 + $0x8] sm:$0xff]  ;;  %s4610_s4 = scalar_lea.vmem %s4547_s9, %s3672_s23 }
  0x3e   : > { %v879_v6 = vld [vmem:[%s3750_s1 + $0x10] sm:$0xff]  ;;  %886 = vadd.xlane.f32.xlu2 %v885_v11  ;;  %v888_v14 = vsel %vm884_vm3, %v878_v12, 0.0 }
  0x3f   : > { %v891_v8 = vsel %vm884_vm3, %v879_v6, 0.0  ;;  %v880_v10 = vld [vmem:[%s3750_s1 + $0x18] sm:$0xff] }
  0x40   : > { %v881_v5 = vld [vmem:[%s3750_s1 + $0x20] sm:$0x3]  ;;  %892 = vadd.xlane.f32.xlu1 %v891_v8  ;;  %v894_v13 = vsel %vm884_vm3, %v880_v10, 0.0  ;;  %s4600_s11 = scalar_lea.vmem %s4599_s10, %s3672_s23  ;;  %s4615_s10 = sld [smem:[#allocation21_spill]] }
  0x41   : > { %v898_v7 = vsel %vm897_vm2, %v881_v5, 0.0  ;;  %v3387_v16 = vpop.eup %3386  ;;  %s4602_s22 = scalar_lea.vmem %s4601_s25, %s3672_s23 }
  0x42   : > { %899 = vadd.xlane.f32.xlu0 %v898_v7  ;;  %v902_v17 = vmul.f32 32.0, %v3387_v16  ;;  %vm906_vm4 = vweird.f32 %v3387_v16  ;;  %s4606_s16 = smov %s4605_s0 }
  0x44   : > { %v903_v18 = vsub.f32 1.0, %v902_v17 }
  0x46   : > { %v904_v19 = vmul.f32 %v3387_v16, %v903_v18 }
  0x48   : > { %889 = vadd.xlane.f32.xlu1 %v888_v14  ;;  %v905_v20 = vadd.f32 %v3387_v16, %v904_v19  ;;  %v3376_v14 = vld [vmem:[%s4600_s11] ss:$0 sm:$0xff]  ;;  %s4611_s11 = sld [smem:[#allocation19_spill]] }
  0x4a   : > { %895 = vadd.xlane.f32.xlu0 %v894_v13  ;;  %v3768_v21 = vsel %vm906_vm4, %v3387_v16, %v905_v20  ;;  %v3377_v20 = vld [vmem:[%s4602_s22] ss:$0 sm:$0xff]  ;;  %s4607_s22 = scalar_lea.vmem %s4543_s5, %s3672_s23 }
  0xb1   : > { %v887_v30 = vpop.xlane.xlu2 %886 }
  0xb2   : > { %v908_v37 = vmul.f32 %v3768_v21, %v887_v30 }
  0xb3   : > { %v893_v23 = vpop.xlane.xlu1 %892 }
  0xb4   : > { %v910_v25 = vmul.f32 %v3768_v21, %v893_v23  ;;  %v3793_v42 = vsub.f32 %v877_v9, %v908_v37 }
  0xb5   : > { %v900_v22 = vpop.xlane.xlu0 %899 }
  0xb6   : > { %v912_v24 = vmul.f32 %v3768_v21, %v900_v22  ;;  %v3774_v27 = vsub.f32 %v879_v6, %v910_v25  ;;  %v918_v45 = vmul.f32 %v3793_v42, %v3793_v42 }
  0xb8   : > { %v3772_v26 = vsub.f32 %v881_v5, %v912_v24  ;;  %v920_v28 = vmul.f32 %v3774_v27, %v3774_v27  ;;  %v923_v46 = vsel %vm884_vm3, %v918_v45, 0.0 }
  0xba   : > { %v922_v29 = vmul.f32 %v3772_v26, %v3772_v26  ;;  %v929_v31 = vsel %vm884_vm3, %v920_v28, 0.0 }
  0xbb   : > { %930 = vadd.xlane.f32.xlu1 %v929_v31  ;;  %v890_v34 = vpop.xlane.xlu1 %889 }
  0xbc   : > { %v935_v32 = vsel %vm897_vm2, %v922_v29, 0.0  ;;  %v909_v36 = vmul.f32 %v3768_v21, %v890_v34 }
  0xbd   : > { %v896_v33 = vpop.xlane.xlu0 %895  ;;  %936 = vadd.xlane.f32.xlu2 %v935_v32 }
  0xbe   : > { %v911_v35 = vmul.f32 %v3768_v21, %v896_v33  ;;  %v3787_v39 = vsub.f32 %v878_v12, %v909_v36 }
  0xc0   : > { %v3785_v38 = vsub.f32 %v880_v10, %v911_v35  ;;  %v919_v41 = vmul.f32 %v3787_v39, %v3787_v39 }
  0xc2   : > { %v921_v40 = vmul.f32 %v3785_v38, %v3785_v38  ;;  %v926_v44 = vsel %vm884_vm3, %v919_v41, 0.0 }
  0xc4   : > { %v932_v43 = vsel %vm884_vm3, %v921_v40, 0.0 }
  0xc5   : > { %933 = vadd.xlane.f32.xlu0 %v932_v43  ;;  %927 = vadd.xlane.f32.xlu2 %v926_v44 }
  0xcd   : > { %924 = vadd.xlane.f32.xlu0 %v923_v46 }
 0x12e   : > { %v931_v47 = vpop.xlane.xlu1 %930 }
 0x12f   : > { %v940_v49 = vmul.f32 %v931_v47, %v3768_v21 }
 0x130   : > { %v937_v48 = vpop.xlane.xlu2 %936 }
 0x131   : > { %v942_v50 = vmul.f32 %v937_v48, %v3768_v21  ;;  %v945_v51 = vadd.f32 1e-05, %v940_v49 }
 0x133   : > { %v947_v52 = vadd.f32 1e-05, %v942_v50  ;;  %3388 = vrsqrt.f32 %v945_v51  ;;  %vm974_vm8 = vweird.f32 %v945_v51 }
 0x135   : > { %3390 = vrsqrt.f32 %v947_v52  ;;  %vm994_vm6 = vweird.f32 %v947_v52 }
 0x138   : > { %v934_v53 = vpop.xlane.xlu0 %933  ;;  %v928_v54 = vpop.xlane.xlu2 %927 }
 0x139   : > { %v941_v55 = vmul.f32 %v934_v53, %v3768_v21  ;;  %v939_v56 = vmul.f32 %v928_v54, %v3768_v21  ;;  %v3389_v57 = vpop.eup %3388  ;;  %v1019_v53 = vld [vmem:[%s3694_s26] sm:$0xff]  ;;  %v1021_v54 = vld [vmem:[%s3694_s26 + $0x10] sm:$0xff] }
 0x13a   : > { %v969_v61 = vmul.f32 %v3389_v57, %v945_v51  ;;  %vm975_vm9 = vweird.f32 %v3389_v57 }
 0x13b   : > { %v946_v58 = vadd.f32 1e-05, %v941_v55  ;;  %v944_v59 = vadd.f32 1e-05, %v939_v56  ;;  %v3391_v60 = vpop.eup %3390  ;;  %vm3816_vm11 = vmor %vm974_vm8, %vm975_vm9  ;;  %v1022_v55 = vld [vmem:[%s3694_s26 + $0x18] sm:$0xff]  ;;  %v1023_v56 = vld [vmem:[%s3694_s26 + $0x20] sm:$0xff] }
 0x13c   : > { %v989_v62 = vmul.f32 %v3391_v60, %v947_v52  ;;  %v970_v63 = vmul.f32 %v3389_v57, %v969_v61  ;;  %vm995_vm5 = vweird.f32 %v3391_v60  ;;  %vm1238_vm8 = vcmask 271360  }
 0x13d   : > { %3392 = vrsqrt.f32 %v946_v58  ;;  %vm996_vm7 = vmor %vm994_vm6, %vm995_vm5  ;;  %vm984_vm12 = vweird.f32 %v946_v58  ;;  %vm964_vm13 = vweird.f32 %v944_v59  ;;  %vm1177_vm6 = vcmask 64512  }
 0x13e   : > { %3394 = vrsqrt.f32 %v944_v59  ;;  %v990_v0 = vmul.f32 %v3391_v60, %v989_v62  ;;  %v971_v1 = vmul.f32 0.5, %v970_v63  ;;  %vm1964_vm9 = vcmask 130048  }
 0x140   : > { %v925_v2 = vpop.xlane.xlu0 %924  ;;  %v991_v3 = vmul.f32 0.5, %v990_v0  ;;  %v972_v9 = vsub.f32 1.5, %v971_v1 }
 0x141   : > { %v938_v4 = vmul.f32 %v925_v2, %v3768_v21 }
 0x142   : > { %v992_v6 = vsub.f32 1.5, %v991_v3  ;;  %v973_v17 = vmul.f32 %v3389_v57, %v972_v9 }
 0x143   : > { %v3393_v5 = vpop.eup %3392  ;;  %v943_v7 = vadd.f32 1e-05, %v938_v4 }
 0x144   : > { %v3395_v8 = vpop.eup %3394  ;;  %v979_v10 = vmul.f32 %v3393_v5, %v946_v58  ;;  %v993_v11 = vmul.f32 %v3391_v60, %v992_v6  ;;  %vm985_vm10 = vweird.f32 %v3393_v5 }
 0x145   : > { %v959_v12 = vmul.f32 %v3395_v8, %v944_v59  ;;  %3396 = vrsqrt.f32 %v943_v7  ;;  %vm965_vm14 = vweird.f32 %v3395_v8  ;;  %vm986_vm15 = vmor %vm984_vm12, %vm985_vm10  ;;  %vm954_vm4 = vweird.f32 %v943_v7 }
 0x146   : > { %v980_v13 = vmul.f32 %v3393_v5, %v979_v10  ;;  %v997_v16 = vsel %vm996_vm7, %v3391_v60, %v993_v11  ;;  %vm966_vm0 = vmor %vm964_vm13, %vm965_vm14  ;;  %vm1225_vm7 = vcmask 277504   ;;  %vm1970_vm10 = vcmask 195584  }
 0x147   : > { %v960_v15 = vmul.f32 %v3395_v8, %v959_v12  ;;  %v1002_v19 = vmul.f32 %v997_v16, %v3772_v26  ;;  %v977_v26 = vsel %vm3816_vm11, %v3389_v57, %v973_v17  ;;  %v1024_v12 = vld [vmem:[%s3694_s26 + $0x28] sm:$0xff]  ;;  %v1025_v16 = vld [vmem:[%s3694_s26 + $0x30] sm:$0xff] }
 0x148   : > { %v981_v18 = vmul.f32 0.5, %v980_v13  ;;  %v1000_v37 = vmul.f32 %v977_v26, %v3774_v27  ;;  %v3869_v13 = vld [vmem:[%s4606_s16 + $0x8] sm:$0xff]  ;;  %v3894_v26 = vld [vmem:[%s4606_s16 + $0x20] sm:$0x3] }
 0x149   : > { %v961_v22 = vmul.f32 0.5, %v960_v15  ;;  %v1010_v24 = vmul.f32 %v3376_v14, %v1002_v19 }
 0x14a   : > { %v982_v23 = vsub.f32 1.5, %v981_v18  ;;  %v1008_v46 = vmul.f32 %v3376_v14, %v1000_v37  ;;  %v3878_v18 = vld [vmem:[%s4606_s16 + $0x10] sm:$0xff] }
 0x14b   : > { %v3397_v25 = vpop.eup %3396  ;;  %v962_v29 = vsub.f32 1.5, %v961_v22  ;;  %v1018_v32 = vadd.f32 %v3377_v20, %v1010_v24  ;;  %v1026_v22 = vld [vmem:[%s3694_s26 + $0x38] sm:$0xff] }
 0x14c   : > { %v983_v30 = vmul.f32 %v3393_v5, %v982_v23  ;;  %v949_v31 = vmul.f32 %v3397_v25, %v943_v7  ;;  %vm955_vm1 = vweird.f32 %v3397_v25  ;;  %v1016_v27 = vadd.f32 %v3377_v20, %v1008_v46  ;;  %v3887_v24 = vld [vmem:[%s4606_s16 + $0x18] sm:$0xff] }
 0x14d   : > { %v963_v33 = vmul.f32 %v3395_v8, %v962_v29  ;;  %3186 = vmatpush.xpose.msk.msra.mxu0 %vm884_vm3, %v1018_v32  ;;  %3314 = vmatpush.xpose.msk.msra.mxu3 %vm884_vm3, %v1018_v32  ;;  %vm956_vm5 = vmor %vm954_vm4, %vm955_vm1 }
 0x14e   : > { %v987_v34 = vsel %vm986_vm15, %v3393_v5, %v983_v30  ;;  %v950_v35 = vmul.f32 %v3397_v25, %v949_v31 }
 0x14f   : > { %v1001_v36 = vmul.f32 %v987_v34, %v3785_v38  ;;  %v967_v40 = vsel %vm966_vm0, %v3395_v8, %v963_v33  ;;  %v3860_v8 = vld [vmem:[%s4605_s0] sm:$0xff] }
 0x150   : > { %v951_v41 = vmul.f32 0.5, %v950_v35  ;;  %v999_v47 = vmul.f32 %v967_v40, %v3787_v39  ;;  %v1027_v33 = vld [vmem:[%s3694_s26 + $0x40] sm:$0xff] }
 0x151   : > { %v1009_v43 = vmul.f32 %v3376_v14, %v1001_v36 }
 0x152   : > { %v952_v44 = vsub.f32 1.5, %v951_v41  ;;  %v1007_v49 = vmul.f32 %v3376_v14, %v999_v47 }
 0x153   : > { %v1017_v45 = vadd.f32 %v3377_v20, %v1009_v43 }
 0x154   : > { %v953_v48 = vmul.f32 %v3397_v25, %v952_v44  ;;  %v1015_v39 = vadd.f32 %v3377_v20, %v1007_v49 }
 0x155   : > { %3187 = vmatpush.xpose.msk.msra.mxu0 %vm884_vm3, %v1017_v45  ;;  %3315 = vmatpush.xpose.msk.msra.mxu3 %vm884_vm3, %v1017_v45  ;;  %v1028_v45 = vld [vmem:[%s3694_s26 + $0x48] sm:$0xff] }
 0x156   : > { %v957_v38 = vsel %vm956_vm5, %v3397_v25, %v953_v48 }
 0x157   : > { %v998_v50 = vmul.f32 %v957_v38, %v3793_v42  ;;  %v1020_v42 = vld [vmem:[%s3694_s26 + $0x8] sm:$0xff] }
 0x159   : > { %3188 = vmatpush.xpose.msk.msra.mxu0 %vm884_vm3, %v1016_v27  ;;  %3316 = vmatpush.xpose.msk.msra.mxu3 %vm884_vm3, %v1016_v27  ;;  %v1006_v51 = vmul.f32 %v3376_v14, %v998_v50 }
 0x15b   : > { %v1014_v52 = vadd.f32 %v3377_v20, %v1006_v51 }
 0x15d   : > { %3189 = vmatpush.xpose.msk.msra.mxu0 %vm884_vm3, %v1015_v39  ;;  %3317 = vmatpush.xpose.msk.msra.mxu3 %vm884_vm3, %v1015_v39 }
 0x161   : > { %3190 = vmatpush.xpose.msk.msra.mxu0 %vm884_vm3, %v1014_v52  ;;  %3318 = vmatpush.xpose.msk.msra.mxu3 %vm884_vm3, %v1014_v52 }
 0x164   : > { %3191 = vmatmul.msk.f32.vlgmr.msra.gmra.mxu0 %vm884_vm3, %v1019_v53  ;;  %3192 = vmatmul.msk.f32.vlgmr.msra.gmra.mxu3 %vm884_vm3, %v1020_v42 }
 0x16c   : > { %3193 = vmatmul.msk.f32.gmra.mxu3 %vm884_vm3, %v1021_v54 }
 0x174   : > { %3194 = vmatmul.msk.f32.gmra.mxu3 %vm884_vm3, %v1022_v55 }
 0x17c   : > { %3195 = vmatmul.msk.f32.gmra.mxu3 %vm884_vm3, %v1023_v56 }
 0x184   : > { %3196 = vmatmul.msk.f32.gmra.mxu3 %vm884_vm3, %v1024_v12 }
 0x18c   : > { %3197 = vmatmul.msk.f32.gmra.mxu3 %vm884_vm3, %v1025_v16 }
 0x194   : > { %3198 = vmatmul.msk.f32.gmra.mxu3 %vm884_vm3, %v1026_v22  ;;  %v1030_v22 = vld [vmem:[%s3694_s26 + $0x58] sm:$0xff] }
 0x19c   : > { %3199 = vmatmul.msk.f32.gmra.mxu3 %vm884_vm3, %v1027_v33 }
 0x1a4   : > { %3200 = vmatmul.msk.f32.gmra.mxu3 %vm884_vm3, %v1028_v45 }
 0x1e1   : > { %v1099_v57 = vpop.f32.mrf.mxu0 }
 0x1e2   : > { %1140 = vxpose.xlu1.b32.start.end [1/1] (short) (narrow) %v1099_v57, 40 }
 0x1e7   : > { %v3846_v58 = vpop.f32.mrf.mxu3 }
 0x1ef   : > { %v3848_v59 = vpop.f32.mrf.mxu3 }
 0x1f7   : > { %v3850_v60 = vpop.f32.mrf.mxu3 }
 0x1ff   : > { %v1111_v61 = vpop.f32.mrf.mxu3 }
 0x200   : > { %1208 = vmatpush.msra.mxu1 %v1111_v61 }
 0x286   : > { %v1156_v62 = vpop.trf.xlu1 }
 0x287   : > { %v1172_v63 = vmul.f32 0.35355338, %v1156_v62  ;;  %v1114_v62 = vpop.f32.mrf.mxu3 }
 0x288   : > { %3319 = vmatpush.msrb.mxu3 %v1114_v62 }
 0x289   : > { %3203 = vmatmul.msk.f32.vlgmr.msra.gmra.mxu1 %vm1177_vm6, %v1172_v63 }
 0x28e   : > { %v1157_v0 = vpop.trf.xlu1 }
 0x28f   : > { %v1173_v1 = vmul.f32 0.35355338, %v1157_v0  ;;  %v1117_v63 = vpop.f32.mrf.mxu3 }
 0x290   : > { %1588 = vmatpush.msra.mxu3 %v1117_v63 }
 0x291   : > { %3204 = vmatmul.msk.f32.gmra.mxu1 %vm1177_vm6, %v1173_v1 }
 0x296   : > { %v1158_v2 = vpop.trf.xlu1 }
 0x297   : > { %v1174_v3 = vmul.f32 0.35355338, %v1158_v2  ;;  %v1120_v0 = vpop.f32.mrf.mxu3 }
 0x299   : > { %3205 = vmatmul.msk.f32.gmra.mxu1 %vm1177_vm6, %v1174_v3 }
 0x29e   : > { %v1159_v4 = vpop.trf.xlu1 }
 0x29f   : > { %v1175_v5 = vmul.f32 0.35355338, %v1159_v4  ;;  %v1123_v1 = vpop.f32.mrf.mxu3 }
 0x2a0   : > { %3208 = vmatpush.xpose.msk.msra.mxu2 %vm1225_vm7, %v1123_v1 }
 0x2a1   : > { %3206 = vmatmul.msk.f32.gmra.mxu1 %vm1177_vm6, %v1175_v5 }
 0x2a4   : > { %1399 = vmatpush.msrb.mxu2 %v1114_v62 }
 0x2a6   : > { %v1160_v6 = vpop.trf.xlu1 }
 0x2a7   : > { %v1176_v7 = vmul.f32 0.35355338, %v1160_v6 }
 0x2a9   : > { %3207 = vmatmul.msk.f32.gmra.mxu1 %vm1177_vm6, %v1176_v7 }
 0x306   : > { %v1210_v9 = vpop.f32.mrf.mxu1 }
 0x307   : > { %v1211_v10 = vadd.f32 %v1210_v9, %v3860_v8 }
 0x309   : > { %v1226_v11 = vsel %vm1225_vm7, %v1211_v10, -inf }
 0x30a   : > { %1227 = vmax.xlane.f32.xlu2 %v1226_v11 }
 0x30e   : > { %v1213_v14 = vpop.f32.mrf.mxu1 }
 0x30f   : > { %v1214_v15 = vadd.f32 %v1213_v14, %v3869_v13 }
 0x311   : > { %v1229_v17 = vsel %vm1225_vm7, %v1214_v15, -inf }
 0x312   : > { %1230 = vmax.xlane.f32.xlu0 %v1229_v17 }
 0x316   : > { %v1216_v19 = vpop.f32.mrf.mxu1 }
 0x317   : > { %v1217_v20 = vadd.f32 %v1216_v19, %v3878_v18 }
 0x319   : > { %v1232_v23 = vsel %vm1225_vm7, %v1217_v20, -inf }
 0x31a   : > { %1233 = vmax.xlane.f32.xlu2 %v1232_v23 }
 0x31e   : > { %v1219_v25 = vpop.f32.mrf.mxu1 }
 0x31f   : > { %v1220_v28 = vadd.f32 %v1219_v25, %v3887_v24 }
 0x321   : > { %v1235_v29 = vsel %vm1225_vm7, %v1220_v28, -inf }
 0x322   : > { %1236 = vmax.xlane.f32.xlu0 %v1235_v29 }
 0x326   : > { %v1222_v30 = vpop.f32.mrf.mxu1 }
 0x327   : > { %v1223_v31 = vadd.f32 %v1222_v30, %v3894_v26 }
 0x329   : > { %v1239_v32 = vsel %vm1238_vm8, %v1223_v31, -inf }
 0x32a   : > { %1240 = vmax.xlane.f32.xlu2 %v1239_v32 }
 0x37d   : > { %v1228_v34 = vpop.xlane.xlu2 %1227 }
 0x37e   : > { %v1242_v35 = vsub.f32 %v1211_v10, %v1228_v34  ;;  %v1126_v10 = vpop.f32.mrf.mxu3 }
 0x37f   : > { %3219 = vmatpush.xpose.msk.msrb.mxu1 %vm1225_vm7, %v1126_v10 }
 0x380   : > { %v1247_v36 = vmul.f32 1.442695, %v1242_v35 }
 0x382   : > { %3398 = vpow2.f32 %v1247_v36 }
 0x383   : > { %1777 = vmatpush.msra.mxu1 %v1120_v0 }
 0x385   : > { %v1231_v37 = vpop.xlane.xlu0 %1230 }
 0x386   : > { %v1243_v40 = vsub.f32 %v1214_v15, %v1231_v37 }
 0x388   : > { %v3399_v41 = vpop.eup %3398  ;;  %v1249_v43 = vmul.f32 1.442695, %v1243_v40 }
 0x389   : > { %v1257_v44 = vsel %vm1225_vm7, %v3399_v41, 0.0 }
 0x38a   : > { %3400 = vpow2.f32 %v1249_v43  ;;  %1258 = vadd.xlane.f32.xlu0 %v1257_v44 }
 0x38d   : > { %v1234_v46 = vpop.xlane.xlu2 %1233 }
 0x38e   : > { %v1244_v47 = vsub.f32 %v1217_v20, %v1234_v46  ;;  %v1029_v20 = vld [vmem:[%s3694_s26 + $0x50] sm:$0xff]  ;;  %s3534_s26 = smov 8  }
 0x38f   : > { %3201 = vmatmul.msk.f32.gmra.mxu3 %vm884_vm3, %v1029_v20 }
 0x390   : > { %v3401_v48 = vpop.eup %3400  ;;  %v1251_v38 = vmul.f32 1.442695, %v1244_v47 }
 0x391   : > { %v1260_v27 = vsel %vm1225_vm7, %v3401_v48, 0.0 }
 0x392   : > { %3402 = vpow2.f32 %v1251_v38  ;;  %1261 = vadd.xlane.f32.xlu2 %v1260_v27 }
 0x395   : > { %v1237_v49 = vpop.xlane.xlu0 %1236 }
 0x396   : > { %v1245_v50 = vsub.f32 %v1220_v28, %v1237_v49 }
 0x397   : > { %3202 = vmatmul.msk.f32.gmra.mxu3 %vm884_vm3, %v1030_v22 }
 0x398   : > { %v3403_v39 = vpop.eup %3402  ;;  %v1253_v51 = vmul.f32 1.442695, %v1245_v50 }
 0x399   : > { %v1263_v52 = vsel %vm1225_vm7, %v3403_v39, 0.0 }
 0x39a   : > { %3404 = vpow2.f32 %v1253_v51  ;;  %1264 = vadd.xlane.f32.xlu0 %v1263_v52 }
 0x39d   : > { %v1241_v53 = vpop.xlane.xlu2 %1240 }
 0x39e   : > { %v1246_v42 = vsub.f32 %v1223_v31, %v1241_v53 }
 0x3a0   : > { %v3405_v54 = vpop.eup %3404  ;;  %v1255_v55 = vmul.f32 1.442695, %v1246_v42 }
 0x3a1   : > { %v1266_v56 = vsel %vm1225_vm7, %v3405_v54, 0.0 }
 0x3a2   : > { %3406 = vpow2.f32 %v1255_v55  ;;  %1267 = vadd.xlane.f32.xlu2 %v1266_v56 }
 0x3a8   : > { %v3407_v57 = vpop.eup %3406 }
 0x3a9   : > { %v1269_v61 = vsel %vm1238_vm8, %v3407_v57, 0.0 }
 0x3aa   : > { %1270 = vadd.xlane.f32.xlu0 %v1269_v61 }
 0x3cb   : > { %1332 = vxpose.xlu2.b32.start.end [1/1] (short) (narrow) %v3846_v58, 40 }
 0x3fd   : > { %v1259_v2 = vpop.xlane.xlu0 %1258 }
 0x3fe   : > { %3408 = vrcp.f32 %v1259_v2 }
 0x404   : > { %v3409_v3 = vpop.eup %3408 }
 0x405   : > { %v1262_v4 = vpop.xlane.xlu2 %1261  ;;  %v1277_v5 = vmul.f32 %v3409_v3, %v3399_v41 }
 0x406   : > { %3410 = vrcp.f32 %v1262_v4 }
 0x407   : > { %3209 = vmatmul.msk.f32.vlgmr.msra.gmra.mxu2 %vm1225_vm7, %v1277_v5 }
 0x40c   : > { %v3411_v6 = vpop.eup %3410 }
 0x40d   : > { %v1265_v7 = vpop.xlane.xlu0 %1264  ;;  %v1278_v9 = vmul.f32 %v3411_v6, %v3401_v48 }
 0x40e   : > { %3412 = vrcp.f32 %v1265_v7 }
 0x40f   : > { %3210 = vmatmul.msk.f32.gmra.mxu2 %vm1225_vm7, %v1278_v9 }
 0x412   : > { %v1129_v43 = vpop.f32.mrf.mxu3 }
 0x413   : > { %3230 = vmatpush.xpose.msk.msra.mxu2 %vm1225_vm7, %v1129_v43 }
 0x414   : > { %v3413_v58 = vpop.eup %3412 }
 0x415   : > { %v1268_v11 = vpop.xlane.xlu2 %1267  ;;  %v1279_v12 = vmul.f32 %v3413_v58, %v3403_v39 }
 0x416   : > { %3414 = vrcp.f32 %v1268_v11 }
 0x417   : > { %3211 = vmatmul.msk.f32.gmra.mxu2 %vm1225_vm7, %v1279_v12 }
 0x41a   : > { %v1132_v44 = vpop.f32.mrf.mxu3 }
 0x41c   : > { %v3415_v14 = vpop.eup %3414 }
 0x41d   : > { %v1271_v15 = vpop.xlane.xlu0 %1270  ;;  %v1280_v16 = vmul.f32 %v3415_v14, %v3405_v54 }
 0x41e   : > { %3416 = vrcp.f32 %v1271_v15 }
 0x41f   : > { %3212 = vmatmul.msk.f32.gmra.mxu2 %vm1225_vm7, %v1280_v16 }
 0x424   : > { %v3417_v17 = vpop.eup %3416 }
 0x425   : > { %v1281_v19 = vmul.f32 %v3417_v17, %v3407_v57 }
 0x427   : > { %3213 = vmatmul.msk.f32.gmra.mxu2 %vm1225_vm7, %v1281_v19 }
 0x464   : > { %v1348_v23 = vpop.trf.xlu2 }
 0x465   : > { %v1364_v25 = vmul.f32 0.35355338, %v1348_v23 }
 0x467   : > { %3214 = vmatmul.msk.f32.vlgmr.msrb.gmra.mxu2 %vm1177_vm6, %v1364_v25 }
 0x46c   : > { %v1349_v28 = vpop.trf.xlu2 }
 0x46d   : > { %v1365_v29 = vmul.f32 0.35355338, %v1349_v28 }
 0x46f   : > { %3215 = vmatmul.msk.f32.gmra.mxu2 %vm1177_vm6, %v1365_v29 }
 0x474   : > { %v1350_v30 = vpop.trf.xlu2 }
 0x475   : > { %v1366_v31 = vmul.f32 0.35355338, %v1350_v30 }
 0x477   : > { %3216 = vmatmul.msk.f32.gmra.mxu2 %vm1177_vm6, %v1366_v31 }
 0x47c   : > { %v1351_v32 = vpop.trf.xlu2 }
 0x47d   : > { %v1367_v33 = vmul.f32 0.35355338, %v1351_v32 }
 0x47f   : > { %3217 = vmatmul.msk.f32.gmra.mxu2 %vm1177_vm6, %v1367_v33 }
 0x484   : > { %v1352_v34 = vpop.trf.xlu2 }
 0x485   : > { %v1368_v35 = vmul.f32 0.35355338, %v1352_v34 }
 0x487   : > { %3218 = vmatmul.msk.f32.vlgmr.msrb.gmra.mxu3 %vm1177_vm6, %v1368_v35 }
 0x488   : > { %3241 = vmatpush.xpose.msk.msrb.mxu3 %vm1225_vm7, %v1132_v44 }
 0x48a   : > { %v3924_v36 = vpop.f32.mrf.mxu2 }
 0x492   : > { %v3926_v37 = vpop.f32.mrf.mxu2 }
 0x49a   : > { %v3928_v40 = vpop.f32.mrf.mxu2 }
 0x4a2   : > { %v3930_v41 = vpop.f32.mrf.mxu2 }
 0x4aa   : > { %v3933_v45 = vpop.f32.mrf.mxu2 }
 0x4ea   : > { %v1401_v46 = vpop.f32.mrf.mxu2 }
 0x4eb   : > { %v1402_v47 = vadd.f32 %v1401_v46, %v3860_v8 }
 0x4ed   : > { %v1416_v48 = vsel %vm1225_vm7, %v1402_v47, -inf }
 0x4ee   : > { %1417 = vmax.xlane.f32.xlu0 %v1416_v48 }
 0x4f2   : > { %v1404_v38 = vpop.f32.mrf.mxu2 }
 0x4f3   : > { %v1405_v27 = vadd.f32 %v1404_v38, %v3869_v13 }
 0x4f5   : > { %v1419_v49 = vsel %vm1225_vm7, %v1405_v27, -inf }
 0x4f6   : > { %1420 = vmax.xlane.f32.xlu0 %v1419_v49 }
 0x4fa   : > { %v1407_v50 = vpop.f32.mrf.mxu2 }
 0x4fb   : > { %v1408_v39 = vadd.f32 %v1407_v50, %v3878_v18 }
 0x4fd   : > { %v1422_v51 = vsel %vm1225_vm7, %v1408_v39, -inf }
 0x4fe   : > { %1423 = vmax.xlane.f32.xlu1 %v1422_v51 }
 0x502   : > { %v1410_v54 = vpop.f32.mrf.mxu2 }
 0x503   : > { %v1411_v55 = vadd.f32 %v1410_v54, %v3887_v24 }
 0x505   : > { %v1425_v56 = vsel %vm1225_vm7, %v1411_v55, -inf }
 0x50a   : > { %v1413_v52 = vpop.f32.mrf.mxu3 }
 0x50b   : > { %v1414_v53 = vadd.f32 %v1413_v52, %v3894_v26 }
 0x50d   : > { %v1428_v42 = vsel %vm1238_vm8, %v1414_v53, -inf }
 0x50e   : > { %1429 = vmax.xlane.f32.xlu0 %v1428_v42 }
 0x516   : > { %1426 = vmax.xlane.f32.xlu0 %v1425_v56 }
 0x561   : > { %v1418_v57 = vpop.xlane.xlu0 %1417 }
 0x562   : > { %v1431_v61 = vsub.f32 %v1402_v47, %v1418_v57 }
 0x564   : > { %v1436_v62 = vmul.f32 1.442695, %v1431_v61 }
 0x566   : > { %3418 = vpow2.f32 %v1436_v62 }
 0x569   : > { %v1421_v63 = vpop.xlane.xlu0 %1420 }
 0x56a   : > { %v1432_v0 = vsub.f32 %v1405_v27, %v1421_v63 }
 0x56c   : > { %v3419_v1 = vpop.eup %3418  ;;  %v1438_v2 = vmul.f32 1.442695, %v1432_v0 }
 0x56d   : > { %v1446_v3 = vsel %vm1225_vm7, %v3419_v1, 0.0 }
 0x56e   : > { %3420 = vpow2.f32 %v1438_v2  ;;  %1447 = vadd.xlane.f32.xlu0 %v1446_v3 }
 0x571   : > { %v1424_v6 = vpop.xlane.xlu1 %1423 }
 0x572   : > { %v1433_v10 = vsub.f32 %v1408_v39, %v1424_v6 }
 0x574   : > { %v3421_v4 = vpop.eup %3420  ;;  %v1440_v11 = vmul.f32 1.442695, %v1433_v10 }
 0x575   : > { %v1449_v5 = vsel %vm1225_vm7, %v3421_v4, 0.0 }
 0x576   : > { %1450 = vadd.xlane.f32.xlu2 %v1449_v5 }
 0x581   : > { %v1430_v7 = vpop.xlane.xlu0 %1429 }
 0x582   : > { %v1435_v9 = vsub.f32 %v1414_v53, %v1430_v7 }
 0x584   : > { %v1444_v58 = vmul.f32 1.442695, %v1435_v9 }
 0x586   : > { %3422 = vpow2.f32 %v1444_v58 }
 0x587   : > { %3424 = vpow2.f32 %v1440_v11 }
 0x589   : > { %v1427_v12 = vpop.xlane.xlu0 %1426 }
 0x58a   : > { %v1434_v15 = vsub.f32 %v1411_v55, %v1427_v12 }
 0x58c   : > { %v3423_v14 = vpop.eup %3422  ;;  %v1442_v17 = vmul.f32 1.442695, %v1434_v15 }
 0x58d   : > { %v1458_v16 = vsel %vm1238_vm8, %v3423_v14, 0.0  ;;  %v3425_v19 = vpop.eup %3424 }
 0x58e   : > { %1459 = vadd.xlane.f32.xlu0 %v1458_v16  ;;  %3426 = vpow2.f32 %v1442_v17  ;;  %v1452_v20 = vsel %vm1225_vm7, %v3425_v19, 0.0 }
 0x594   : > { %v3427_v22 = vpop.eup %3426 }
 0x595   : > { %v1455_v23 = vsel %vm1225_vm7, %v3427_v22, 0.0 }
 0x596   : > { %1453 = vadd.xlane.f32.xlu0 %v1452_v20 }
 0x59e   : > { %1456 = vadd.xlane.f32.xlu0 %v1455_v23 }
 0x5c7   : > { %1521 = vxpose.xlu0.b32.start.end [1/1] (short) (narrow) %v3848_v59, 40 }
 0x5e1   : > { %v1448_v25 = vpop.xlane.xlu0 %1447 }
 0x5e2   : > { %3428 = vrcp.f32 %v1448_v25 }
 0x5e8   : > { %v3429_v28 = vpop.eup %3428 }
 0x5e9   : > { %v1451_v29 = vpop.xlane.xlu2 %1450  ;;  %v1466_v30 = vmul.f32 %v3429_v28, %v3419_v1 }
 0x5ea   : > { %3430 = vrcp.f32 %v1451_v29 }
 0x5eb   : > { %3220 = vmatmul.msk.f32.vlgmr.msrb.gmra.mxu1 %vm1225_vm7, %v1466_v30 }
 0x5ef   : > { %1710 = vxpose.xlu0.b32.start.end [1/1] (short) (narrow) %v3850_v60, 40 }
 0x5f0   : > { %v3431_v31 = vpop.eup %3430 }
 0x5f1   : > { %v1467_v32 = vmul.f32 %v3431_v31, %v3421_v4 }
 0x5f3   : > { %3221 = vmatmul.msk.f32.gmra.mxu1 %vm1225_vm7, %v1467_v32 }
 0x601   : > { %v1460_v33 = vpop.xlane.xlu0 %1459 }
 0x609   : > { %v1454_v34 = vpop.xlane.xlu0 %1453 }
 0x60a   : > { %3432 = vrcp.f32 %v1454_v34 }
 0x610   : > { %v3433_v35 = vpop.eup %3432 }
 0x611   : > { %v1457_v43 = vpop.xlane.xlu0 %1456  ;;  %v1468_v59 = vmul.f32 %v3433_v35, %v3425_v19 }
 0x612   : > { %3434 = vrcp.f32 %v1457_v43 }
 0x613   : > { %3222 = vmatmul.msk.f32.gmra.mxu1 %vm1225_vm7, %v1468_v59  ;;  %3436 = vrcp.f32 %v1460_v33 }
 0x618   : > { %v3435_v44 = vpop.eup %3434 }
 0x619   : > { %v1469_v46 = vmul.f32 %v3435_v44, %v3427_v22  ;;  %v3437_v47 = vpop.eup %3436 }
 0x61a   : > { %v1470_v60 = vmul.f32 %v3437_v47, %v3423_v14 }
 0x61b   : > { %3223 = vmatmul.msk.f32.gmra.mxu1 %vm1225_vm7, %v1469_v46 }
 0x623   : > { %3224 = vmatmul.msk.f32.gmra.mxu1 %vm1225_vm7, %v1470_v60 }
 0x668   : > { %v3968_v3 = vpop.f32.mrf.mxu1 }
 0x66b   : > { %v1537_v48 = vpop.trf.xlu0 }
 0x66c   : > { %v1553_v38 = vmul.f32 0.35355338, %v1537_v48 }
 0x66e   : > { %3225 = vmatmul.msk.f32.vlgmr.msra.gmra.mxu3 %vm1177_vm6, %v1553_v38 }
 0x670   : > { %v3970_v4 = vpop.f32.mrf.mxu1 }
 0x673   : > { %v1538_v27 = vpop.trf.xlu0 }
 0x674   : > { %v1554_v49 = vmul.f32 0.35355338, %v1538_v27 }
 0x676   : > { %3226 = vmatmul.msk.f32.gmra.mxu3 %vm1177_vm6, %v1554_v49 }
 0x67b   : > { %v1539_v50 = vpop.trf.xlu0 }
 0x67c   : > { %v1555_v39 = vmul.f32 0.35355338, %v1539_v50 }
 0x67e   : > { %3227 = vmatmul.msk.f32.gmra.mxu3 %vm1177_vm6, %v1555_v39 }
 0x683   : > { %v1540_v51 = vpop.trf.xlu0 }
 0x684   : > { %v1556_v52 = vmul.f32 0.35355338, %v1540_v51 }
 0x686   : > { %3228 = vmatmul.msk.f32.gmra.mxu3 %vm1177_vm6, %v1556_v52 }
 0x68b   : > { %v1541_v53 = vpop.trf.xlu0 }
 0x68c   : > { %v1557_v42 = vmul.f32 0.35355338, %v1541_v53 }
 0x68e   : > { %3229 = vmatmul.msk.f32.gmra.mxu3 %vm1177_vm6, %v1557_v42 }
 0x690   : > { %v3974_v9 = vpop.f32.mrf.mxu1 }
 0x693   : > { %v1726_v54 = vpop.trf.xlu0 }
 0x694   : > { %v1742_v55 = vmul.f32 0.35355338, %v1726_v54 }
 0x696   : > { %3236 = vmatmul.msk.f32.vlgmr.msra.gmra.mxu1 %vm1177_vm6, %v1742_v55 }
 0x698   : > { %v3978_v12 = vpop.f32.mrf.mxu1 }
 0x69b   : > { %v1727_v56 = vpop.trf.xlu0 }
 0x69c   : > { %v1743_v57 = vmul.f32 0.35355338, %v1727_v56 }
 0x69e   : > { %3237 = vmatmul.msk.f32.gmra.mxu1 %vm1177_vm6, %v1743_v57 }
 0x6a0   : > { %v3982_v17 = vpop.f32.mrf.mxu1 }
 0x6a3   : > { %v1728_v61 = vpop.trf.xlu0 }
 0x6a4   : > { %v1744_v62 = vmul.f32 0.35355338, %v1728_v61 }
 0x6a6   : > { %3238 = vmatmul.msk.f32.gmra.mxu1 %vm1177_vm6, %v1744_v62 }
 0x6ab   : > { %v1729_v63 = vpop.trf.xlu0 }
 0x6ac   : > { %v1745_v0 = vmul.f32 0.35355338, %v1729_v63 }
 0x6ae   : > { %3239 = vmatmul.msk.f32.gmra.mxu1 %vm1177_vm6, %v1745_v0 }
 0x6b3   : > { %v1730_v1 = vpop.trf.xlu0 }
 0x6b4   : > { %v1746_v2 = vmul.f32 0.35355338, %v1730_v1 }
 0x6b6   : > { %3240 = vmatmul.msk.f32.gmra.mxu1 %vm1177_vm6, %v1746_v2 }
 0x6f1   : > { %v1590_v5 = vpop.f32.mrf.mxu3 }
 0x6f2   : > { %v1591_v6 = vadd.f32 %v1590_v5, %v3860_v8 }
 0x6f4   : > { %v1605_v7 = vsel %vm1225_vm7, %v1591_v6, -inf }
 0x6f5   : > { %1606 = vmax.xlane.f32.xlu1 %v1605_v7 }
 0x6f9   : > { %v1593_v10 = vpop.f32.mrf.mxu3 }
 0x6fa   : > { %v1594_v58 = vadd.f32 %v1593_v10, %v3869_v13 }
 0x6fc   : > { %v1608_v11 = vsel %vm1225_vm7, %v1594_v58, -inf }
 0x6fd   : > { %1609 = vmax.xlane.f32.xlu1 %v1608_v11 }
 0x701   : > { %v1596_v14 = vpop.f32.mrf.mxu3 }
 0x702   : > { %v1597_v15 = vadd.f32 %v1596_v14, %v3878_v18 }
 0x704   : > { %v1611_v16 = vsel %vm1225_vm7, %v1597_v15, -inf }
 0x705   : > { %1612 = vmax.xlane.f32.xlu1 %v1611_v16 }
 0x709   : > { %v1599_v31 = vpop.f32.mrf.mxu3 }
 0x70a   : > { %v1600_v33 = vadd.f32 %v1599_v31, %v3887_v24 }
 0x70c   : > { %v1614_v43 = vsel %vm1225_vm7, %v1600_v33, -inf }
 0x713   : > { %v1779_v19 = vpop.f32.mrf.mxu1 }
 0x714   : > { %v1780_v20 = vadd.f32 %v1779_v19, %v3860_v8 }
 0x716   : > { %v1794_v22 = vsel %vm1225_vm7, %v1780_v20, -inf }
 0x717   : > { %1795 = vmax.xlane.f32.xlu0 %v1794_v22 }
 0x71b   : > { %v1782_v23 = vpop.f32.mrf.mxu1 }
 0x71c   : > { %v1783_v25 = vadd.f32 %v1782_v23, %v3869_v13  ;;  %v1602_v13 = vpop.f32.mrf.mxu3 }
 0x71d   : > { %v3995_v59 = vadd.f32 %v1602_v13, %v3894_v26 }
 0x71e   : > { %v1797_v28 = vsel %vm1225_vm7, %v1783_v25, -inf }
 0x71f   : > { %1798 = vmax.xlane.f32.xlu1 %v1797_v28  ;;  %v1617_v47 = vsel %vm1238_vm8, %v3995_v59, -inf }
 0x723   : > { %v1785_v29 = vpop.f32.mrf.mxu1 }
 0x724   : > { %v1786_v30 = vadd.f32 %v1785_v29, %v3878_v18 }
 0x726   : > { %v1800_v32 = vsel %vm1225_vm7, %v1786_v30, -inf }
 0x727   : > { %1801 = vmax.xlane.f32.xlu1 %v1800_v32 }
 0x72b   : > { %v1788_v34 = vpop.f32.mrf.mxu1 }
 0x72c   : > { %v1789_v8 = vadd.f32 %v1788_v34, %v3887_v24 }
 0x72e   : > { %v1803_v35 = vsel %vm1225_vm7, %v1789_v8, -inf }
 0x72f   : > { %1804 = vmax.xlane.f32.xlu2 %v1803_v35  ;;  %1615 = vmax.xlane.f32.xlu1 %v1614_v43 }
 0x733   : > { %v1791_v18 = vpop.f32.mrf.mxu1 }
 0x734   : > { %v1792_v44 = vadd.f32 %v1791_v18, %v3894_v26 }
 0x736   : > { %v1806_v46 = vsel %vm1238_vm8, %v1792_v44, -inf }
 0x737   : > { %1807 = vmax.xlane.f32.xlu2 %v1806_v46  ;;  %1618 = vmax.xlane.f32.xlu1 %v1617_v47 }
 0x768   : > { %v1607_v24 = vpop.xlane.xlu1 %1606 }
 0x769   : > { %v1620_v60 = vsub.f32 %v1591_v6, %v1607_v24 }
 0x76b   : > { %v1625_v48 = vmul.f32 1.442695, %v1620_v60 }
 0x76d   : > { %3438 = vpow2.f32 %v1625_v48 }
 0x770   : > { %v1610_v38 = vpop.xlane.xlu1 %1609 }
 0x771   : > { %v1621_v27 = vsub.f32 %v1594_v58, %v1610_v38 }
 0x773   : > { %v4001_v49 = vpop.eup %3438  ;;  %v1627_v50 = vmul.f32 1.442695, %v1621_v27 }
 0x774   : > { %v1635_v39 = vsel %vm1225_vm7, %v4001_v49, 0.0 }
 0x775   : > { %3440 = vpow2.f32 %v1627_v50  ;;  %1636 = vadd.xlane.f32.xlu1 %v1635_v39 }
 0x778   : > { %v1613_v26 = vpop.xlane.xlu1 %1612 }
 0x779   : > { %v1622_v51 = vsub.f32 %v1597_v15, %v1613_v26 }
 0x77b   : > { %v4005_v52 = vpop.eup %3440  ;;  %v1629_v53 = vmul.f32 1.442695, %v1622_v51 }
 0x77c   : > { %v1638_v42 = vsel %vm1225_vm7, %v4005_v52, 0.0 }
 0x77d   : > { %3442 = vpow2.f32 %v1629_v53  ;;  %1639 = vadd.xlane.f32.xlu1 %v1638_v42 }
 0x783   : > { %v4009_v54 = vpop.eup %3442 }
 0x784   : > { %v1641_v55 = vsel %vm1225_vm7, %v4009_v54, 0.0 }
 0x785   : > { %1642 = vadd.xlane.f32.xlu1 %v1641_v55 }
 0x78a   : > { %v1796_v56 = vpop.xlane.xlu0 %1795 }
 0x78b   : > { %v1809_v57 = vsub.f32 %v1780_v20, %v1796_v56 }
 0x78d   : > { %v1814_v61 = vmul.f32 1.442695, %v1809_v57 }
 0x78f   : > { %3444 = vpow2.f32 %v1814_v61 }
 0x792   : > { %v1799_v62 = vpop.xlane.xlu1 %1798 }
 0x793   : > { %v1810_v63 = vsub.f32 %v1783_v25, %v1799_v62 }
 0x795   : > { %v4013_v0 = vpop.eup %3444  ;;  %v1816_v1 = vmul.f32 1.442695, %v1810_v63 }
 0x796   : > { %v1824_v2 = vsel %vm1225_vm7, %v4013_v0, 0.0 }
 0x797   : > { %3446 = vpow2.f32 %v1816_v1  ;;  %1825 = vadd.xlane.f32.xlu2 %v1824_v2 }
 0x79a   : > { %v1802_v5 = vpop.xlane.xlu1 %1801 }
 0x79b   : > { %v1811_v6 = vsub.f32 %v1786_v30, %v1802_v5 }
 0x79d   : > { %v4017_v7 = vpop.eup %3446  ;;  %v1818_v10 = vmul.f32 1.442695, %v1811_v6 }
 0x79e   : > { %v1827_v58 = vsel %vm1225_vm7, %v4017_v7, 0.0 }
 0x79f   : > { %3448 = vpow2.f32 %v1818_v10  ;;  %1828 = vadd.xlane.f32.xlu2 %v1827_v58 }
 0x7a2   : > { %v1805_v11 = vpop.xlane.xlu2 %1804  ;;  %v1616_v14 = vpop.xlane.xlu1 %1615 }
 0x7a3   : > { %v1812_v15 = vsub.f32 %v1789_v8, %v1805_v11  ;;  %v1623_v16 = vsub.f32 %v1600_v33, %v1616_v14 }
 0x7a5   : > { %v3449_v19 = vpop.eup %3448  ;;  %v1820_v20 = vmul.f32 1.442695, %v1812_v15  ;;  %v1631_v22 = vmul.f32 1.442695, %v1623_v16 }
 0x7a6   : > { %v1830_v23 = vsel %vm1225_vm7, %v3449_v19, 0.0 }
 0x7a7   : > { %3450 = vpow2.f32 %v1820_v20  ;;  %1831 = vadd.xlane.f32.xlu2 %v1830_v23  ;;  %v1978_v23 = vld [vmem:[%s3699_s2 + $0x10] sm:$0xff] }
 0x7a8   : > { %3452 = vpow2.f32 %v1631_v22 }
 0x7aa   : > { %v1808_v25 = vpop.xlane.xlu2 %1807  ;;  %v1619_v28 = vpop.xlane.xlu1 %1618 }
 0x7ab   : > { %v1813_v29 = vsub.f32 %v1792_v44, %v1808_v25  ;;  %v1624_v30 = vsub.f32 %v3995_v59, %v1619_v28  ;;  %v1977_v25 = vld [vmem:[%s3699_s2 + $0x8] sm:$0xff] }
 0x7ad   : > { %v3451_v31 = vpop.eup %3450  ;;  %v1822_v32 = vmul.f32 1.442695, %v1813_v29  ;;  %v1633_v34 = vmul.f32 1.442695, %v1624_v30 }
 0x7ae   : > { %v3453_v35 = vpop.eup %3452  ;;  %v1833_v8 = vsel %vm1225_vm7, %v3451_v31, 0.0 }
 0x7af   : > { %3454 = vpow2.f32 %v1822_v32  ;;  %v1644_v33 = vsel %vm1225_vm7, %v3453_v35, 0.0  ;;  %1834 = vadd.xlane.f32.xlu2 %v1833_v8 }
 0x7b0   : > { %3456 = vpow2.f32 %v1633_v34  ;;  %1645 = vadd.xlane.f32.xlu1 %v1644_v33 }
 0x7b5   : > { %v3455_v43 = vpop.eup %3454 }
 0x7b6   : > { %v3457_v13 = vpop.eup %3456  ;;  %v1836_v18 = vsel %vm1238_vm8, %v3455_v43, 0.0 }
 0x7b7   : > { %v1647_v44 = vsel %vm1238_vm8, %v3457_v13, 0.0  ;;  %1837 = vadd.xlane.f32.xlu2 %v1836_v18 }
 0x7b8   : > { %1648 = vadd.xlane.f32.xlu1 %v1647_v44 }
 0x7d1   : > { %1904 = vrot.lane.b32.xlu1 %v3968_v3, %s3534_s26 }
 0x7d9   : > { %1906 = vrot.lane.b32.xlu1 %v3970_v4, %s3534_s26 }
 0x7e8   : > { %v1637_v59 = vpop.xlane.xlu1 %1636 }
 0x7e9   : > { %3458 = vrcp.f32 %v1637_v59 }
 0x7ef   : > { %v3459_v46 = vpop.eup %3458 }
 0x7f0   : > { %v1655_v47 = vmul.f32 %v3459_v46, %v4001_v49  ;;  %v1640_v24 = vpop.xlane.xlu1 %1639 }
 0x7f1   : > { %3460 = vrcp.f32 %v1640_v24 }
 0x7f2   : > { %3231 = vmatmul.msk.f32.vlgmr.msra.gmra.mxu2 %vm1225_vm7, %v1655_v47 }
 0x7f7   : > { %v3461_v60 = vpop.eup %3460 }
 0x7f8   : > { %v1643_v48 = vpop.xlane.xlu1 %1642  ;;  %v1656_v38 = vmul.f32 %v3461_v60, %v4005_v52 }
 0x7f9   : > { %3462 = vrcp.f32 %v1643_v48 }
 0x7fa   : > { %3232 = vmatmul.msk.f32.gmra.mxu2 %vm1225_vm7, %v1656_v38 }
 0x7ff   : > { %v3463_v3 = vpop.eup %3462 }
 0x800   : > { %v1657_v27 = vmul.f32 %v3463_v3, %v4009_v54 }
 0x802   : > { %3233 = vmatmul.msk.f32.gmra.mxu2 %vm1225_vm7, %v1657_v27 }
 0x80a   : > { %v1826_v4 = vpop.xlane.xlu2 %1825 }
 0x80b   : > { %3464 = vrcp.f32 %v1826_v4 }
 0x811   : > { %v3465_v50 = vpop.eup %3464 }
 0x812   : > { %v1844_v49 = vmul.f32 %v3465_v50, %v4013_v0  ;;  %v1829_v39 = vpop.xlane.xlu2 %1828 }
 0x813   : > { %3466 = vrcp.f32 %v1829_v39 }
 0x814   : > { %3242 = vmatmul.msk.f32.vlgmr.msrb.gmra.mxu3 %vm1225_vm7, %v1844_v49 }
 0x819   : > { %v3467_v26 = vpop.eup %3466 }
 0x81a   : > { %v1832_v51 = vpop.xlane.xlu2 %1831  ;;  %v1845_v52 = vmul.f32 %v3467_v26, %v4017_v7 }
 0x81b   : > { %3468 = vrcp.f32 %v1832_v51 }
 0x81c   : > { %3243 = vmatmul.msk.f32.gmra.mxu3 %vm1225_vm7, %v1845_v52  ;;  %v3488_v52 = vld [vmem:[%s3750_s1] sm:$0xff] }
 0x821   : > { %v3469_v53 = vpop.eup %3468 }
 0x822   : > { %v1835_v42 = vpop.xlane.xlu2 %1834  ;;  %v1846_v54 = vmul.f32 %v3469_v53, %v3449_v19 }
 0x823   : > { %v1646_v55 = vpop.xlane.xlu1 %1645  ;;  %3470 = vrcp.f32 %v1835_v42 }
 0x824   : > { %3472 = vrcp.f32 %v1646_v55  ;;  %3244 = vmatmul.msk.f32.gmra.mxu3 %vm1225_vm7, %v1846_v54  ;;  %v3489_v55 = vld [vmem:[%s3750_s1 + $0x8] sm:$0xff] }
 0x829   : > { %v3471_v56 = vpop.eup %3470 }
 0x82a   : > { %v3473_v57 = vpop.eup %3472  ;;  %v1838_v61 = vpop.xlane.xlu2 %1837  ;;  %v1847_v62 = vmul.f32 %v3471_v56, %v3451_v31 }
 0x82b   : > { %v1649_v63 = vpop.xlane.xlu1 %1648  ;;  %3474 = vrcp.f32 %v1838_v61  ;;  %v1658_v0 = vmul.f32 %v3473_v57, %v3453_v35 }
 0x82c   : > { %3476 = vrcp.f32 %v1649_v63  ;;  %3245 = vmatmul.msk.f32.gmra.mxu3 %vm1225_vm7, %v1847_v62  ;;  %v3490_v63 = vld [vmem:[%s3750_s1 + $0x10] sm:$0xff] }
 0x82d   : > { %3234 = vmatmul.msk.f32.gmra.mxu2 %vm1225_vm7, %v1658_v0 }
 0x831   : > { %v3475_v1 = vpop.eup %3474 }
 0x832   : > { %v3477_v2 = vpop.eup %3476  ;;  %v1848_v5 = vmul.f32 %v3475_v1, %v3455_v43 }
 0x833   : > { %v1659_v6 = vmul.f32 %v3477_v2, %v3457_v13 }
 0x834   : > { %3246 = vmatmul.msk.f32.gmra.mxu3 %vm1225_vm7, %v1848_v5 }
 0x835   : > { %3235 = vmatmul.msk.f32.gmra.mxu2 %vm1225_vm7, %v1659_v6  ;;  %v3491_v6 = vld [vmem:[%s3750_s1 + $0x18] sm:$0xff] }
 0x843   : > { %v1905_v30 = vpop.permute.xlu1 %1904 }
 0x84b   : > { %v1907_v35 = vpop.permute.xlu1 %1906 }
 0x84c   : > { %v1960_v43 = vsel %vm1177_vm6, %v3926_v37, %v1907_v35 }
 0x875   : > { %v1695_v7 = vpop.f32.mrf.mxu2 }
 0x876   : > { %1924 = vrot.lane.b32.xlu2 %v1695_v7, %s3535_s18 }
 0x87d   : > { %v1698_v10 = vpop.f32.mrf.mxu2 }
 0x87e   : > { %1926 = vrot.lane.b32.xlu2 %v1698_v10, %s3535_s18 }
 0x885   : > { %v1701_v58 = vpop.f32.mrf.mxu2 }
 0x886   : > { %1928 = vrot.lane.b32.xlu1 %v1701_v58, %s3535_s18 }
 0x897   : > { %v1884_v11 = vpop.f32.mrf.mxu3 }
 0x898   : > { %1944 = vrot.lane.b32.xlu2 %v1884_v11, %s3536_s24 }
 0x89f   : > { %v1887_v14 = vpop.f32.mrf.mxu3 }
 0x8a0   : > { %1908 = vrot.lane.b32.xlu2 %v3974_v9, %s3534_s26  ;;  %1946 = vrot.lane.b32.xlu1 %v1887_v14, %s3536_s24  ;;  %v1979_v9 = vld [vmem:[%s3699_s2 + $0x18] sm:$0xff]  ;;  %v3492_v14 = vld [vmem:[%s3750_s1 + $0x20] sm:$0x3] }
 0x8a1   : > { %2011 = vmatpush.msrb.mxu2 %v1979_v9 }
 0x8a3   : > { %2012 = vmatpush.msrb.mxu2 %v1978_v23 }
 0x8a5   : > { %2013 = vmatpush.msrb.mxu2 %v1977_v25 }
 0x8a7   : > { %v1890_v15 = vpop.f32.mrf.mxu3 }
 0x8a8   : > { %1910 = vrot.lane.b32.xlu1 %v3978_v12, %s3534_s26  ;;  %1948 = vrot.lane.b32.xlu2 %v1890_v15, %s3536_s24  ;;  %v1976_v12 = vld [vmem:[%s3699_s2] sm:$0xff] }
 0x8a9   : > { %2014 = vmatpush.msrb.mxu2 %v1976_v12 }
 0x8af   : > { %v1893_v16 = vpop.f32.mrf.mxu3 }
 0x8b0   : > { %v1704_v19 = vpop.f32.mrf.mxu2  ;;  %1912 = vrot.lane.b32.xlu1 %v3982_v17, %s3534_s26  ;;  %1950 = vrot.lane.b32.xlu2 %v1893_v16, %s3536_s24  ;;  %v1959_v17 = vsel %vm1177_vm6, %v3924_v36, %v1905_v30 }
 0x8b1   : > { %1930 = vrot.lane.b32.xlu0 %v1704_v19, %s3535_s18 }
 0x8b7   : > { %v1896_v20 = vpop.f32.mrf.mxu3 }
 0x8b8   : > { %v1707_v22 = vpop.f32.mrf.mxu2  ;;  %1952 = vrot.lane.b32.xlu1 %v1896_v20, %s3536_s24 }
 0x8b9   : > { %1932 = vrot.lane.b32.xlu2 %v1707_v22, %s3535_s18 }
 0x8d0   : > { %v1925_v28 = vpop.permute.xlu2 %1924 }
 0x8d1   : > { %v1965_v31 = vsel %vm1964_vm9, %v1959_v17, %v1925_v28 }
 0x8d8   : > { %v1927_v29 = vpop.permute.xlu2 %1926 }
 0x8d9   : > { %v1966_v13 = vsel %vm1964_vm9, %v1960_v43, %v1927_v29 }
 0x8f2   : > { %v1945_v32 = vpop.permute.xlu2 %1944 }
 0x8f3   : > { %v1971_v34 = vsel %vm1970_vm10, %v1965_v31, %v1945_v32 }
 0x8f4   : > { %3247 = vmatmul.msk.f32.vlgmr.msrb.gmra.mxu2 %vm884_vm3, %v1971_v34 }
 0x8f8   : > { %v1929_v8 = vpop.permute.xlu1 %1928 }
 0x8fa   : > { %v1909_v33 = vpop.permute.xlu2 %1908 }
 0x8fb   : > { %v1961_v59 = vsel %vm1177_vm6, %v3928_v40, %v1909_v33 }
 0x8fc   : > { %v1967_v47 = vsel %vm1964_vm9, %v1961_v59, %v1929_v8 }
 0x902   : > { %v1949_v36 = vpop.permute.xlu2 %1948 }
 0x903   : > { %v1973_v24 = vsel %vm1970_vm10, %v1967_v47, %v1949_v36 }
 0x90a   : > { %v1951_v37 = vpop.permute.xlu2 %1950 }
 0x912   : > { %v1947_v18 = vpop.permute.xlu1 %1946 }
 0x913   : > { %v1972_v44 = vsel %vm1970_vm10, %v1966_v13, %v1947_v18  ;;  %v1933_v4 = vpop.permute.xlu2 %1932 }
 0x914   : > { %3248 = vmatmul.msk.f32.gmra.mxu2 %vm884_vm3, %v1972_v44 }
 0x91a   : > { %v1911_v46 = vpop.permute.xlu1 %1910 }
 0x91b   : > { %v1962_v48 = vsel %vm1177_vm6, %v3930_v41, %v1911_v46  ;;  %v3378_v41 = vld [vmem:[%s4607_s22] ss:$0 sm:$0xff]  ;;  %s4612_s22 = sld [smem:[#allocation8_spill]] }
 0x91c   : > { %3249 = vmatmul.msk.f32.gmra.mxu2 %vm884_vm3, %v1973_v24  ;;  %v2167_v24 = vld [vmem:[%s3712_s30 + $0x18] sm:$0xff] }
 0x91d   : > { %2199 = vmatpush.msra.mxu2 %v2167_v24 }
 0x922   : > { %v1913_v60 = vpop.permute.xlu1 %1912 }
 0x923   : > { %v1931_v38 = vpop.permute.xlu0 %1930  ;;  %v1963_v40 = vsel %vm1177_vm6, %v3933_v45, %v1913_v60  ;;  %v2165_v60 = vld [vmem:[%s3712_s30 + $0x8] sm:$0xff] }
 0x924   : > { %v1968_v3 = vsel %vm1964_vm9, %v1962_v48, %v1931_v38  ;;  %v1969_v49 = vsel %vm1964_vm9, %v1963_v40, %v1933_v4  ;;  %v2164_v48 = vld [vmem:[%s3712_s30] sm:$0xff] }
 0x925   : > { %v1974_v27 = vsel %vm1970_vm10, %v1968_v3, %v1951_v37  ;;  %v2166_v37 = vld [vmem:[%s3712_s30 + $0x10] sm:$0xff]  ;;  %s4608_s30 = scalar_lea.vmem %s4544_s6, %s3672_s23 }
 0x926   : > { %3250 = vmatmul.msk.f32.gmra.mxu2 %vm884_vm3, %v1974_v27 }
 0x927   : > { %2200 = vmatpush.msra.mxu2 %v2166_v37 }
 0x929   : > { %2201 = vmatpush.msra.mxu2 %v2165_v60 }
 0x92a   : > { %v1953_v50 = vpop.permute.xlu1 %1952 }
 0x92b   : > { %v1975_v39 = vsel %vm1970_vm10, %v1969_v49, %v1953_v50  ;;  %2202 = vmatpush.msra.mxu2 %v2164_v48 }
 0x92e   : > { %3251 = vmatmul.msk.f32.gmra.mxu2 %vm884_vm3, %v1975_v39 }
 0x977   : > { %v2016_v26 = vpop.f32.mrf.mxu2 }
 0x978   : > { %v2017_v51 = vadd.f32 %v3378_v41, %v2016_v26  ;;  %v4152_v26 = vld [vmem:[%s4608_s30] ss:$0 sm:$0xff]  ;;  %s4613_s30 = sld [smem:[#allocation16_spill]] }
 0x97a   : > { %v4087_v53 = vadd.f32 %v3488_v52, %v2017_v51 }
 0x97c   : > { %v2038_v45 = vsel %vm884_vm3, %v4087_v53, 0.0 }
 0x97d   : > { %2039 = vadd.xlane.f32.xlu2 %v2038_v45  ;;  %v4159_v45 = vld [vmem:[%s4609_s20] ss:$0 sm:$0xff] }
 0x97e   : > { %s4614_s0 = scalar_lea.vmem %s4613_s30, %s3672_s23 }
 0x997   : > { %v2019_v42 = vpop.f32.mrf.mxu2 }
 0x998   : > { %v2020_v54 = vadd.f32 %v3378_v41, %v2019_v42 }
 0x99a   : > { %v4092_v56 = vadd.f32 %v3489_v55, %v2020_v54 }
 0x99c   : > { %v2041_v57 = vsel %vm884_vm3, %v4092_v56, 0.0 }
 0x99d   : > { %2042 = vadd.xlane.f32.xlu1 %v2041_v57 }
 0x99f   : > { %v2022_v61 = vpop.f32.mrf.mxu2 }
 0x9a0   : > { %v2023_v62 = vadd.f32 %v3378_v41, %v2022_v61 }
 0x9a2   : > { %v4097_v0 = vadd.f32 %v3490_v63, %v2023_v62 }
 0x9a4   : > { %v2044_v1 = vsel %vm884_vm3, %v4097_v0, 0.0 }
 0x9a5   : > { %2045 = vadd.xlane.f32.xlu0 %v2044_v1 }
 0x9a9   : > { %v2025_v2 = vpop.f32.mrf.mxu2 }
 0x9aa   : > { %v2026_v5 = vadd.f32 %v3378_v41, %v2025_v2 }
 0x9ac   : > { %v4102_v7 = vadd.f32 %v3491_v6, %v2026_v5 }
 0x9ae   : > { %v2047_v10 = vsel %vm884_vm3, %v4102_v7, 0.0 }
 0x9af   : > { %2048 = vadd.xlane.f32.xlu2 %v2047_v10 }
 0x9b1   : > { %v2028_v58 = vpop.f32.mrf.mxu2 }
 0x9b2   : > { %v2029_v11 = vadd.f32 %v3378_v41, %v2028_v58 }
 0x9b4   : > { %v4107_v15 = vadd.f32 %v3492_v14, %v2029_v11 }
 0x9b6   : > { %v2050_v16 = vsel %vm897_vm2, %v4107_v15, 0.0 }
 0x9b7   : > { %2051 = vadd.xlane.f32.xlu1 %v2050_v16 }
 0x9f0   : > { %v2040_v19 = vpop.xlane.xlu2 %2039 }
 0x9f1   : > { %v2053_v20 = vmul.f32 %v2040_v19, %v3768_v21 }
 0x9f3   : > { %v2058_v22 = vsub.f32 %v4087_v53, %v2053_v20 }
 0x9f5   : > { %v2063_v9 = vmul.f32 %v2058_v22, %v2058_v22 }
 0x9f7   : > { %v2068_v23 = vsel %vm884_vm3, %v2063_v9, 0.0 }
 0x9f8   : > { %2069 = vadd.xlane.f32.xlu0 %v2068_v23 }
 0xa10   : > { %v2043_v25 = vpop.xlane.xlu1 %2042 }
 0xa11   : > { %v2054_v12 = vmul.f32 %v2043_v25, %v3768_v21 }
 0xa13   : > { %v4116_v28 = vsub.f32 %v4092_v56, %v2054_v12 }
 0xa15   : > { %v2064_v29 = vmul.f32 %v4116_v28, %v4116_v28 }
 0xa17   : > { %v2071_v30 = vsel %vm884_vm3, %v2064_v29, 0.0 }
 0xa18   : > { %2072 = vadd.xlane.f32.xlu2 %v2071_v30  ;;  %v2046_v17 = vpop.xlane.xlu0 %2045 }
 0xa19   : > { %v2055_v31 = vmul.f32 %v2046_v17, %v3768_v21 }
 0xa1b   : > { %v4123_v32 = vsub.f32 %v4097_v0, %v2055_v31 }
 0xa1d   : > { %v2065_v34 = vmul.f32 %v4123_v32, %v4123_v32 }
 0xa1f   : > { %v2074_v35 = vsel %vm884_vm3, %v2065_v34, 0.0 }
 0xa20   : > { %2075 = vadd.xlane.f32.xlu1 %v2074_v35 }
 0xa22   : > { %v2049_v8 = vpop.xlane.xlu2 %2048 }
 0xa23   : > { %v2056_v33 = vmul.f32 %v2049_v8, %v3768_v21 }
 0xa25   : > { %v4130_v43 = vsub.f32 %v4102_v7, %v2056_v33 }
 0xa27   : > { %v2066_v13 = vmul.f32 %v4130_v43, %v4130_v43 }
 0xa29   : > { %v2077_v18 = vsel %vm884_vm3, %v2066_v13, 0.0 }
 0xa2a   : > { %v2052_v44 = vpop.xlane.xlu1 %2051  ;;  %2078 = vadd.xlane.f32.xlu0 %v2077_v18 }
 0xa2b   : > { %v2057_v36 = vmul.f32 %v2052_v44, %v3768_v21 }
 0xa2d   : > { %v4137_v59 = vsub.f32 %v4107_v15, %v2057_v36 }
 0xa2f   : > { %v2067_v46 = vmul.f32 %v4137_v59, %v4137_v59 }
 0xa31   : > { %v2080_v47 = vsel %vm897_vm2, %v2067_v46, 0.0 }
 0xa32   : > { %2081 = vadd.xlane.f32.xlu2 %v2080_v47 }
 0xa6b   : > { %v2070_v38 = vpop.xlane.xlu0 %2069 }
 0xa6c   : > { %v2083_v3 = vmul.f32 %v2070_v38, %v3768_v21 }
 0xa6e   : > { %v2088_v27 = vadd.f32 1e-05, %v2083_v3 }
 0xa70   : > { %3478 = vrsqrt.f32 %v2088_v27  ;;  %vm2099_vm12 = vweird.f32 %v2088_v27 }
 0xa76   : > { %v3479_v40 = vpop.eup %3478 }
 0xa77   : > { %v2094_v4 = vmul.f32 %v3479_v40, %v2088_v27  ;;  %vm2100_vm11 = vweird.f32 %v3479_v40 }
 0xa78   : > { %vm2101_vm13 = vmor %vm2099_vm12, %vm2100_vm11 }
 0xa79   : > { %v2095_v50 = vmul.f32 %v3479_v40, %v2094_v4 }
 0xa7b   : > { %v2096_v49 = vmul.f32 0.5, %v2095_v50 }
 0xa7d   : > { %v2097_v39 = vsub.f32 1.5, %v2096_v49 }
 0xa7f   : > { %v2098_v41 = vmul.f32 %v3479_v40, %v2097_v39 }
 0xa81   : > { %v2102_v51 = vsel %vm2101_vm13, %v3479_v40, %v2098_v41  ;;  %vm2400_vm13 = vcmask 1041408  }
 0xa82   : > { %v2143_v52 = vmul.f32 %v2102_v51, %v2058_v22 }
 0xa84   : > { %v2151_v42 = vmul.f32 %v4152_v26, %v2143_v52 }
 0xa86   : > { %v2159_v54 = vadd.f32 %v4159_v45, %v2151_v42 }
 0xa88   : > { %3252 = vmatmul.msk.f32.vlgmr.msra.gmra.mxu2 %vm884_vm3, %v2159_v54  ;;  %v3381_v54 = vld [vmem:[%s4610_s4] ss:$0 sm:$0xff] }
 0xa8b   : > { %v2073_v55 = vpop.xlane.xlu2 %2072 }
 0xa8c   : > { %v2084_v57 = vmul.f32 %v2073_v55, %v3768_v21 }
 0xa8e   : > { %v2089_v61 = vadd.f32 1e-05, %v2084_v57 }
 0xa90   : > { %3480 = vrsqrt.f32 %v2089_v61  ;;  %vm2109_vm15 = vweird.f32 %v2089_v61 }
 0xa93   : > { %v2076_v62 = vpop.xlane.xlu1 %2075 }
 0xa94   : > { %v2085_v63 = vmul.f32 %v2076_v62, %v3768_v21 }
 0xa96   : > { %v3481_v1 = vpop.eup %3480  ;;  %v2090_v2 = vadd.f32 1e-05, %v2085_v63 }
 0xa97   : > { %v2104_v5 = vmul.f32 %v3481_v1, %v2089_v61  ;;  %vm2110_vm14 = vweird.f32 %v3481_v1 }
 0xa98   : > { %3482 = vrsqrt.f32 %v2090_v2  ;;  %vm2111_vm0 = vmor %vm2109_vm15, %vm2110_vm14  ;;  %vm2119_vm4 = vweird.f32 %v2090_v2  ;;  %vm2566_vm14 = vcmask 1045504   ;;  %vm2597_vm15 = vcmask 1043456  }
 0xa99   : > { %v2105_v6 = vmul.f32 %v3481_v1, %v2104_v5 }
 0xa9b   : > { %v2106_v10 = vmul.f32 0.5, %v2105_v6 }
 0xa9d   : > { %v2107_v58 = vsub.f32 1.5, %v2106_v10  ;;  %v2079_v11 = vpop.xlane.xlu0 %2078 }
 0xa9e   : > { %v3483_v14 = vpop.eup %3482  ;;  %v2086_v16 = vmul.f32 %v2079_v11, %v3768_v21 }
 0xa9f   : > { %v2108_v19 = vmul.f32 %v3481_v1, %v2107_v58  ;;  %v2114_v20 = vmul.f32 %v3483_v14, %v2090_v2  ;;  %vm2120_vm1 = vweird.f32 %v3483_v14 }
 0xaa0   : > { %v2091_v22 = vadd.f32 1e-05, %v2086_v16  ;;  %vm2121_vm5 = vmor %vm2119_vm4, %vm2120_vm1 }
 0xaa1   : > { %v2112_v9 = vsel %vm2111_vm0, %v3481_v1, %v2108_v19  ;;  %v2115_v23 = vmul.f32 %v3483_v14, %v2114_v20 }
 0xaa2   : > { %3484 = vrsqrt.f32 %v2091_v22  ;;  %v2144_v25 = vmul.f32 %v2112_v9, %v4116_v28  ;;  %vm2129_vm8 = vweird.f32 %v2091_v22 }
 0xaa3   : > { %v2116_v12 = vmul.f32 0.5, %v2115_v23 }
 0xaa4   : > { %v2152_v29 = vmul.f32 %v4152_v26, %v2144_v25 }
 0xaa5   : > { %v2117_v30 = vsub.f32 1.5, %v2116_v12  ;;  %v2082_v17 = vpop.xlane.xlu2 %2081 }
 0xaa6   : > { %v2087_v31 = vmul.f32 %v2082_v17, %v3768_v21  ;;  %v2160_v34 = vadd.f32 %v4159_v45, %v2152_v29 }
 0xaa7   : > { %v2118_v35 = vmul.f32 %v3483_v14, %v2117_v30 }
 0xaa8   : > { %v3485_v8 = vpop.eup %3484  ;;  %v2092_v33 = vadd.f32 1e-05, %v2087_v31  ;;  %3253 = vmatmul.msk.f32.gmra.mxu2 %vm884_vm3, %v2160_v34 }
 0xaa9   : > { %v2122_v13 = vsel %vm2121_vm5, %v3483_v14, %v2118_v35  ;;  %v2124_v18 = vmul.f32 %v3485_v8, %v2091_v22  ;;  %vm2130_vm6 = vweird.f32 %v3485_v8 }
 0xaaa   : > { %3486 = vrsqrt.f32 %v2092_v33  ;;  %v2145_v28 = vmul.f32 %v2122_v13, %v4123_v32  ;;  %vm2131_vm9 = vmor %vm2129_vm8, %vm2130_vm6  ;;  %vm2139_vm11 = vweird.f32 %v2092_v33  ;;  %v2244_v13 = vld [vmem:[%s4611_s11] sm:$0xff] }
 0xaab   : > { %v2125_v44 = vmul.f32 %v3485_v8, %v2124_v18  ;;  %v2245_v18 = vld [vmem:[%s4611_s11 + $0x8] sm:$0xff] }
 0xaac   : > { %v2153_v36 = vmul.f32 %v4152_v26, %v2145_v28  ;;  %v2246_v28 = vld [vmem:[%s4611_s11 + $0x10] sm:$0xff] }
 0xaad   : > { %v2126_v46 = vmul.f32 0.5, %v2125_v44  ;;  %v2247_v44 = vld [vmem:[%s4611_s11 + $0x18] sm:$0xff] }
 0xaae   : > { %v2161_v21 = vadd.f32 %v4159_v45, %v2153_v36  ;;  %v2248_v36 = vld [vmem:[%s4611_s11 + $0x20] sm:$0xff] }
 0xaaf   : > { %v2127_v47 = vsub.f32 1.5, %v2126_v46  ;;  %v2249_v46 = vld [vmem:[%s4611_s11 + $0x28] sm:$0xff] }
 0xab0   : > { %v3487_v24 = vpop.eup %3486  ;;  %3254 = vmatmul.msk.f32.gmra.mxu2 %vm884_vm3, %v2161_v21  ;;  %v2269_v21 = vld [vmem:[%s4611_s11 + $0xc8] sm:$0xff] }
 0xab1   : > { %v2128_v37 = vmul.f32 %v3485_v8, %v2127_v47  ;;  %v2134_v60 = vmul.f32 %v3487_v24, %v2092_v33  ;;  %vm2140_vm10 = vweird.f32 %v3487_v24  ;;  %v2250_v47 = vld [vmem:[%s4611_s11 + $0x30] sm:$0xff] }
 0xab2   : > { %vm2141_vm12 = vmor %vm2139_vm11, %vm2140_vm10 }
 0xab3   : > { %v2132_v48 = vsel %vm2131_vm9, %v3485_v8, %v2128_v37  ;;  %v2135_v38 = vmul.f32 %v3487_v24, %v2134_v60  ;;  %v2251_v37 = vld [vmem:[%s4611_s11 + $0x38] sm:$0xff] }
 0xab4   : > { %v2146_v3 = vmul.f32 %v2132_v48, %v4130_v43  ;;  %v2271_v60 = vld [vmem:[%s4611_s11 + $0xd8] sm:$0xff]  ;;  %v2252_v48 = vld [vmem:[%s4611_s11 + $0x40] sm:$0xff] }
 0xab5   : > { %v2136_v32 = vmul.f32 0.5, %v2135_v38  ;;  %v2272_v38 = vld [vmem:[%s4611_s11 + $0xe0] sm:$0xff] }
 0xab6   : > { %v2154_v27 = vmul.f32 %v4152_v26, %v2146_v3  ;;  %v2253_v3 = vld [vmem:[%s4611_s11 + $0x48] sm:$0xff] }
 0xab7   : > { %v2137_v40 = vsub.f32 1.5, %v2136_v32  ;;  %v2273_v32 = vld [vmem:[%s4611_s11 + $0xe8] sm:$0xff] }
 0xab8   : > { %v2162_v4 = vadd.f32 %v4159_v45, %v2154_v27  ;;  %v2254_v27 = vld [vmem:[%s4611_s11 + $0x50] sm:$0xff] }
 0xab9   : > { %v2138_v50 = vmul.f32 %v3487_v24, %v2137_v40  ;;  %v2274_v40 = vld [vmem:[%s4611_s11 + $0xf0] sm:$0xff] }
 0xaba   : > { %3255 = vmatmul.msk.f32.gmra.mxu2 %vm884_vm3, %v2162_v4  ;;  %v2255_v4 = vld [vmem:[%s4611_s11 + $0x58] sm:$0xff] }
 0xabb   : > { %v2142_v49 = vsel %vm2141_vm12, %v3487_v24, %v2138_v50  ;;  %v2270_v24 = vld [vmem:[%s4611_s11 + $0xd0] sm:$0xff]  ;;  %v2275_v50 = vld [vmem:[%s4611_s11 + $0xf8] sm:$0xff] }
 0xabc   : > { %v2147_v39 = vmul.f32 %v2142_v49, %v4137_v59  ;;  %v2256_v49 = vld [vmem:[%s4611_s11 + $0x60] sm:$0xff] }
 0xabe   : > { %v2155_v41 = vmul.f32 %v4152_v26, %v2147_v39  ;;  %v2276_v39 = vld [vmem:[%s4611_s11 + $0x100] sm:$0xff] }
 0xac0   : > { %v2163_v43 = vadd.f32 %v4159_v45, %v2155_v41  ;;  %v2257_v41 = vld [vmem:[%s4611_s11 + $0x68] sm:$0xff] }
 0xac2   : > { %3256 = vmatmul.msk.f32.gmra.mxu2 %vm884_vm3, %v2163_v43  ;;  %v2277_v43 = vld [vmem:[%s4611_s11 + $0x108] sm:$0xff] }
 0xb0b   : > { %v2204_v51 = vpop.f32.mrf.mxu2 }
 0xb0c   : > { %v2205_v59 = vadd.f32 %v3381_v54, %v2204_v51  ;;  %v2258_v51 = vld [vmem:[%s4611_s11 + $0x70] sm:$0xff] }
 0xb0e   : > { %v2219_v6 = vadd.f32 3.0, %v2205_v59 }
 0xb10   : > { %v2224_v19 = vmax.f32 %v2219_v6, 0.0 }
 0xb12   : > { %v2229_v12 = vmin.f32 %v2224_v19, 6.0  ;;  %v2265_v19 = vld [vmem:[%s4611_s11 + $0xa8] sm:$0xff] }
 0xb14   : > { %v2234_v35 = vmul.f32 %v2229_v12, %v2205_v59  ;;  %v2281_v59 = vld [vmem:[%s4611_s11 + $0x128] sm:$0xff] }
 0xb16   : > { %v2239_v33 = vmul.f32 0.16666667, %v2234_v35 }
 0xb2b   : > { %v2207_v52 = vpop.f32.mrf.mxu2 }
 0xb2c   : > { %v2208_v62 = vadd.f32 %v3381_v54, %v2207_v52  ;;  %v2278_v52 = vld [vmem:[%s4611_s11 + $0x110] sm:$0xff] }
 0xb2e   : > { %v2220_v2 = vadd.f32 3.0, %v2208_v62 }
 0xb30   : > { %v2225_v11 = vmax.f32 %v2220_v2, 0.0  ;;  %v2282_v2 = vld [vmem:[%s4611_s11 + $0x130] sm:$0x3] }
 0xb32   : > { %v2230_v9 = vmin.f32 %v2225_v11, 6.0 }
 0xb33   : > { %v2210_v42 = vpop.f32.mrf.mxu2 }
 0xb34   : > { %v2211_v61 = vadd.f32 %v3381_v54, %v2210_v42  ;;  %v2235_v31 = vmul.f32 %v2230_v9, %v2208_v62  ;;  %v2259_v42 = vld [vmem:[%s4611_s11 + $0x78] sm:$0xff] }
 0xb36   : > { %v2221_v1 = vadd.f32 3.0, %v2211_v61  ;;  %v2240_v8 = vmul.f32 0.16666667, %v2235_v31  ;;  %v3382_v31 = vld [vmem:[%s4614_s0] ss:$0 sm:$0xff] }
 0xb38   : > { %v2226_v10 = vmax.f32 %v2221_v1, 0.0 }
 0xb3a   : > { %v2231_v20 = vmin.f32 %v2226_v10, 6.0  ;;  %v2264_v10 = vld [vmem:[%s4611_s11 + $0xa0] sm:$0xff] }
 0xb3c   : > { %v2236_v30 = vmul.f32 %v2231_v20, %v2211_v61  ;;  %v2280_v61 = vld [vmem:[%s4611_s11 + $0x120] sm:$0xff] }
 0xb3d   : > { %v2213_v55 = vpop.f32.mrf.mxu2 }
 0xb3e   : > { %v2214_v57 = vadd.f32 %v3381_v54, %v2213_v55  ;;  %v2241_v34 = vmul.f32 0.16666667, %v2236_v30  ;;  %v2266_v30 = vld [vmem:[%s4611_s11 + $0xb0] sm:$0xff] }
 0xb40   : > { %v2222_v63 = vadd.f32 3.0, %v2214_v57 }
 0xb42   : > { %v2227_v45 = vmax.f32 %v2222_v63, 0.0  ;;  %v2261_v63 = vld [vmem:[%s4611_s11 + $0x88] sm:$0xff] }
 0xb44   : > { %v2232_v14 = vmin.f32 %v2227_v45, 6.0 }
 0xb45   : > { %v2216_v26 = vpop.f32.mrf.mxu2 }
 0xb46   : > { %v2217_v5 = vadd.f32 %v3381_v54, %v2216_v26  ;;  %v2237_v25 = vmul.f32 %v2232_v14, %v2214_v57  ;;  %v2279_v54 = vld [vmem:[%s4611_s11 + $0x118] sm:$0xff]  ;;  %v2260_v57 = vld [vmem:[%s4611_s11 + $0x80] sm:$0xff]  ;;  %v2262_v26 = vld [vmem:[%s4611_s11 + $0x90] sm:$0xff] }
 0xb48   : > { %v2223_v58 = vadd.f32 3.0, %v2217_v5  ;;  %v2242_v17 = vmul.f32 0.16666667, %v2237_v25 }
 0xb4a   : > { %v2228_v16 = vmax.f32 %v2223_v58, 0.0  ;;  %v4333_v58 = vld [vmem:[%s4612_s22] sm:$0xff] }
 0xb4b   : > { %v2555_v11 = vperm.slane %v4333_v58, 1  ;;  %v2544_v25 = vperm.slane %v4333_v58, 0 }
 0xb4c   : > { %v2233_v22 = vmin.f32 %v2228_v16, 6.0 }
 0xb4e   : > { %v2238_v23 = vmul.f32 %v2233_v22, %v2217_v5  ;;  %v2263_v5 = vld [vmem:[%s4611_s11 + $0x98] sm:$0xff] }
 0xb50   : > { %v2243_v29 = vmul.f32 0.16666667, %v2238_v23 }
 0xb52   : > { %3257 = vmatpush.msk.msrb.mxu0 %vm2400_vm13, %v2243_v29  ;;  %3320 = vmatpush.msk.msrb.mxu1 %vm2400_vm13, %v2243_v29 }
 0xb54   : > { %2416 = vmatpush.msrb.mxu0 %v2242_v17  ;;  %3321 = vmatpush.msrb.mxu1 %v2242_v17 }
 0xb56   : > { %2417 = vmatpush.msrb.mxu0 %v2241_v34  ;;  %3322 = vmatpush.msrb.mxu1 %v2241_v34 }
 0xb58   : > { %2418 = vmatpush.msrb.mxu0 %v2240_v8  ;;  %3323 = vmatpush.msrb.mxu1 %v2240_v8 }
 0xb5a   : > { %2419 = vmatpush.msrb.mxu0 %v2239_v33  ;;  %3324 = vmatpush.msrb.mxu1 %v2239_v33 }
 0xb5b   : > { %3258 = vmatmul.msk.f32.vlgmr.msrb.gmra.mxu0 %vm1225_vm7, %v2244_v13  ;;  %3283 = vmatmul.msk.f32.vlgmr.msrb.gmra.mxu1 %vm1225_vm7, %v2269_v21 }
 0xb63   : > { %3259 = vmatmul.msk.f32.gmra.mxu0 %vm1225_vm7, %v2245_v18  ;;  %3284 = vmatmul.msk.f32.gmra.mxu1 %vm1225_vm7, %v2270_v24 }
 0xb6b   : > { %3260 = vmatmul.msk.f32.gmra.mxu0 %vm1225_vm7, %v2246_v28  ;;  %3285 = vmatmul.msk.f32.gmra.mxu1 %vm1225_vm7, %v2271_v60  ;;  %v2267_v28 = vld [vmem:[%s4611_s11 + $0xb8] sm:$0xff] }
 0xb73   : > { %3261 = vmatmul.msk.f32.gmra.mxu0 %vm1225_vm7, %v2247_v44  ;;  %3286 = vmatmul.msk.f32.gmra.mxu1 %vm1225_vm7, %v2272_v38 }
 0xb7b   : > { %3262 = vmatmul.msk.f32.gmra.mxu0 %vm1225_vm7, %v2248_v36  ;;  %3287 = vmatmul.msk.f32.gmra.mxu1 %vm1225_vm7, %v2273_v32 }
 0xb83   : > { %3263 = vmatmul.msk.f32.gmra.mxu0 %vm1225_vm7, %v2249_v46  ;;  %3288 = vmatmul.msk.f32.gmra.mxu1 %vm1225_vm7, %v2274_v40 }
 0xb8b   : > { %3264 = vmatmul.msk.f32.gmra.mxu0 %vm1225_vm7, %v2250_v47  ;;  %3289 = vmatmul.msk.f32.gmra.mxu1 %vm1225_vm7, %v2275_v50 }
 0xb93   : > { %3265 = vmatmul.msk.f32.gmra.mxu0 %vm1225_vm7, %v2251_v37  ;;  %3290 = vmatmul.msk.f32.gmra.mxu1 %vm1225_vm7, %v2276_v39 }
 0xb9b   : > { %3266 = vmatmul.msk.f32.gmra.mxu0 %vm1225_vm7, %v2252_v48  ;;  %3291 = vmatmul.msk.f32.gmra.mxu1 %vm1225_vm7, %v2277_v43  ;;  %v2268_v48 = vld [vmem:[%s4611_s11 + $0xc0] sm:$0xff] }
 0xba3   : > { %3267 = vmatmul.msk.f32.gmra.mxu0 %vm1225_vm7, %v2253_v3  ;;  %3292 = vmatmul.msk.f32.gmra.mxu1 %vm1225_vm7, %v2278_v52 }
 0xbab   : > { %3268 = vmatmul.msk.f32.gmra.mxu0 %vm1225_vm7, %v2254_v27  ;;  %3293 = vmatmul.msk.f32.gmra.mxu1 %vm1225_vm7, %v2279_v54  ;;  %v2586_v27 = vperm.slane %v4333_v58, 2 }
 0xbb3   : > { %3269 = vmatmul.msk.f32.gmra.mxu0 %vm1225_vm7, %v2255_v4  ;;  %3294 = vmatmul.msk.f32.gmra.mxu1 %vm1225_vm7, %v2280_v61 }
 0xbbb   : > { %3270 = vmatmul.msk.f32.gmra.mxu0 %vm1225_vm7, %v2256_v49  ;;  %3295 = vmatmul.msk.f32.gmra.mxu1 %vm1225_vm7, %v2281_v59 }
 0xbc3   : > { %3271 = vmatmul.msk.f32.gmra.mxu0 %vm1225_vm7, %v2257_v41  ;;  %3296 = vmatmul.msk.f32.gmra.mxu1 %vm1225_vm7, %v2282_v2 }
 0xbcb   : > { %3272 = vmatmul.msk.f32.gmra.mxu0 %vm1225_vm7, %v2258_v51 }
 0xbd3   : > { %3273 = vmatmul.msk.f32.gmra.mxu0 %vm1225_vm7, %v2259_v42 }
 0xbd8   : > { %v4299_v55 = vpop.f32.mrf.mxu0 }
 0xbd9   : > { %v2545_v49 = vmul.f32 %v2544_v25, %v4299_v55 }
 0xbdb   : > { %3274 = vmatmul.msk.f32.gmra.mxu0 %vm1225_vm7, %v2260_v57  ;;  %v2550_v52 = vadd.f32 %v3382_v31, %v2545_v49 }
 0xbe0   : > { %v2424_v62 = vpop.f32.mrf.mxu0 }
 0xbe1   : > { %v2546_v12 = vmul.f32 %v2544_v25, %v2424_v62 }
 0xbe3   : > { %3275 = vmatmul.msk.f32.gmra.mxu0 %vm1225_vm7, %v2261_v63  ;;  %v2551_v35 = vadd.f32 %v3382_v31, %v2546_v12 }
 0xbe8   : > { %v2427_v1 = vpop.f32.mrf.mxu0 }
 0xbe9   : > { %v2547_v13 = vmul.f32 %v2544_v25, %v2427_v1  ;;  %v4366_v1 = vpop.f32.mrf.mxu1 }
 0xbeb   : > { %3276 = vmatmul.msk.f32.gmra.mxu0 %vm1225_vm7, %v2262_v26  ;;  %v2552_v46 = vadd.f32 %v3382_v31, %v2547_v13 }
 0xbf0   : > { %v2430_v45 = vpop.f32.mrf.mxu0 }
 0xbf1   : > { %v2548_v37 = vmul.f32 %v2544_v25, %v2430_v45 }
 0xbf3   : > { %3277 = vmatmul.msk.f32.gmra.mxu0 %vm1225_vm7, %v2263_v5  ;;  %v2553_v40 = vadd.f32 %v3382_v31, %v2548_v37 }
 0xbf8   : > { %v2433_v6 = vpop.f32.mrf.mxu0 }
 0xbf9   : > { %v2556_v14 = vmul.f32 %v2555_v11, %v2433_v6  ;;  %v2549_v24 = vmul.f32 %v2544_v25, %v2433_v6 }
 0xbfb   : > { %3278 = vmatmul.msk.f32.gmra.mxu0 %vm1225_vm7, %v2264_v10  ;;  %v2567_v22 = vrot.slane %v2556_v14, 2  ;;  %v2554_v3 = vadd.f32 %v3382_v31, %v2549_v24  ;;  %v4369_v10 = vpop.f32.mrf.mxu1 }
 0xc00   : > { %v2436_v16 = vpop.f32.mrf.mxu0 }
 0xc01   : > { %v2557_v20 = vmul.f32 %v2555_v11, %v2436_v16 }
 0xc03   : > { %v2568_v9 = vrot.slane %v2557_v20, 2  ;;  %3279 = vmatmul.msk.f32.gmra.mxu0 %vm1225_vm7, %v2265_v19  ;;  %v4374_v12 = vpop.f32.mrf.mxu1 }
 0xc05   : > { %v2569_v23 = vsel %vm2566_vm14, %v2567_v22, %v2568_v9  ;;  %v2617_v22 = vperm.slane %v4333_v58, 3 }
 0xc06   : > { %v2581_v57 = vadd.f32 %v2569_v23, %v2550_v52  ;;  %v2761_v52 = vld [vmem:[%s3732_s17 + $0x10] sm:$0xff] }
 0xc08   : > { %v2439_v29 = vpop.f32.mrf.mxu0 }
 0xc09   : > { %v2558_v17 = vmul.f32 %v2555_v11, %v2439_v29 }
 0xc0b   : > { %v2570_v34 = vrot.slane %v2558_v17, 2  ;;  %3280 = vmatmul.msk.f32.gmra.mxu0 %vm1225_vm7, %v2266_v30  ;;  %v4379_v13 = vpop.f32.mrf.mxu1 }
 0xc0d   : > { %v2571_v8 = vsel %vm2566_vm14, %v2568_v9, %v2570_v34 }
 0xc0e   : > { %v2582_v33 = vadd.f32 %v2571_v8, %v2551_v35 }
 0xc10   : > { %v2442_v18 = vpop.f32.mrf.mxu0 }
 0xc11   : > { %v2559_v44 = vmul.f32 %v2555_v11, %v2442_v18 }
 0xc13   : > { %v2572_v36 = vrot.slane %v2559_v44, 2  ;;  %3281 = vmatmul.msk.f32.gmra.mxu0 %vm1225_vm7, %v2267_v28  ;;  %v2766_v44 = vld [vmem:[%s3732_s17 + $0x38] sm:$0xff]  ;;  %v4385_v24 = vpop.f32.mrf.mxu1 }
 0xc14   : > { %2795 = vmatpush.msra.mxu3 %v2766_v44 }
 0xc15   : > { %v2573_v21 = vsel %vm2566_vm14, %v2570_v34, %v2572_v36 }
 0xc16   : > { %v2583_v47 = vadd.f32 %v2573_v21, %v2552_v46 }
 0xc18   : > { %v2445_v60 = vpop.f32.mrf.mxu0 }
 0xc19   : > { %v2560_v38 = vmul.f32 %v2555_v11, %v2445_v60  ;;  %v2587_v41 = vmul.f32 %v2586_v27, %v2445_v60  ;;  %v2765_v60 = vld [vmem:[%s3732_s17 + $0x30] sm:$0xff] }
 0xc1a   : > { %2796 = vmatpush.msra.mxu3 %v2765_v60 }
 0xc1b   : > { %v2574_v32 = vrot.slane %v2560_v38, 2  ;;  %3282 = vmatmul.msk.f32.gmra.mxu0 %vm1225_vm7, %v2268_v48  ;;  %v2598_v42 = vrot.slane %v2587_v41, 4  ;;  %vm2771_vm7 = vcmask 523264  }
 0xc1d   : > { %v2575_v4 = vsel %vm2566_vm14, %v2572_v36, %v2574_v32  ;;  %v2585_v50 = vadd.f32 %v2574_v32, %v2554_v3 }
 0xc1e   : > { %v2584_v39 = vadd.f32 %v2575_v4, %v2553_v40  ;;  %v2764_v40 = vld [vmem:[%s3732_s17 + $0x28] sm:$0xff]  ;;  %v2763_v4 = vld [vmem:[%s3732_s17 + $0x20] sm:$0xff] }
 0xc1f   : > { %2797 = vmatpush.msra.mxu3 %v2764_v40 }
 0xc20   : > { %v2448_v43 = vpop.f32.mrf.mxu0 }
 0xc21   : > { %v2588_v51 = vmul.f32 %v2586_v27, %v2448_v43  ;;  %2798 = vmatpush.msra.mxu3 %v2763_v4 }
 0xc23   : > { %v2599_v54 = vrot.slane %v2588_v51, 4  ;;  %v2762_v51 = vld [vmem:[%s3732_s17 + $0x18] sm:$0xff] }
 0xc24   : > { %2799 = vmatpush.msra.mxu3 %v2762_v51 }
 0xc25   : > { %v2600_v61 = vsel %vm2597_vm15, %v2598_v42, %v2599_v54 }
 0xc26   : > { %v2612_v62 = vadd.f32 %v2600_v61, %v2581_v57  ;;  %2800 = vmatpush.msra.mxu3 %v2761_v52 }
 0xc28   : > { %v2451_v63 = vpop.f32.mrf.mxu0 }
 0xc29   : > { %v2589_v59 = vmul.f32 %v2586_v27, %v2451_v63  ;;  %v2759_v63 = vld [vmem:[%s3732_s17] sm:$0xff] }
 0xc2b   : > { %v2601_v26 = vrot.slane %v2589_v59, 4 }
 0xc2d   : > { %v2602_v2 = vsel %vm2597_vm15, %v2599_v54, %v2601_v26 }
 0xc2e   : > { %v2613_v55 = vadd.f32 %v2602_v2, %v2582_v33 }
 0xc30   : > { %v2454_v45 = vpop.f32.mrf.mxu0 }
 0xc31   : > { %v2590_v5 = vmul.f32 %v2586_v27, %v2454_v45  ;;  %v2647_v45 = vperm.slane %v4333_v58, 4 }
 0xc33   : > { %v2603_v6 = vrot.slane %v2590_v5, 4 }
 0xc35   : > { %v2604_v11 = vsel %vm2597_vm15, %v2601_v26, %v2603_v6  ;;  %v4403_v26 = vperm.slane %v4333_v58, 5 }
 0xc36   : > { %v2614_v14 = vadd.f32 %v2604_v11, %v2583_v47 }
 0xc38   : > { %v2457_v16 = vpop.f32.mrf.mxu0 }
 0xc39   : > { %v2591_v19 = vmul.f32 %v2586_v27, %v2457_v16  ;;  %v2618_v29 = vmul.f32 %v2617_v22, %v2457_v16 }
 0xc3b   : > { %v2605_v20 = vrot.slane %v2591_v19, 4  ;;  %v2628_v31 = vrot.slane %v2618_v29, 6  ;;  %v4415_v19 = vperm.slane %v4333_v58, 7 }
 0xc3d   : > { %v2606_v9 = vsel %vm2597_vm15, %v2603_v6, %v2605_v20  ;;  %v2616_v23 = vadd.f32 %v2605_v20, %v2585_v50  ;;  %v2511_v50 = vpop.f32.mrf.mxu1 }
 0xc3e   : > { %v2615_v25 = vadd.f32 %v2606_v9, %v2584_v39 }
 0xc40   : > { %v2460_v30 = vpop.f32.mrf.mxu0 }
 0xc41   : > { %v2619_v17 = vmul.f32 %v2617_v22, %v2460_v30 }
 0xc43   : > { %v2629_v34 = vrot.slane %v2619_v17, 6  ;;  %v2719_v17 = vmul.f32 %v4415_v19, %v4385_v24 }
 0xc45   : > { %v2630_v35 = vsel %vm2400_vm13, %v2628_v31, %v2629_v34  ;;  %v2514_v42 = vpop.f32.mrf.mxu1 }
 0xc46   : > { %v4377_v8 = vadd.f32 %v2630_v35, %v2612_v62  ;;  %v2760_v62 = vld [vmem:[%s3732_s17 + $0x8] sm:$0xff]  ;;  %v2721_v40 = vmul.f32 %v4415_v19, %v2514_v42 }
 0xc47   : > { %2801 = vmatpush.msra.mxu3 %v2760_v62  ;;  %v2851_v62 = vld [vmem:[%s3741_s3 + $0x38] sm:$0xff] }
 0xc48   : > { %v2463_v33 = vpop.f32.mrf.mxu0  ;;  %v2732_v51 = vrot.slane %v2721_v40, 6  ;;  %2879 = vmatpush.msrb.mxu2 %v2851_v62 }
 0xc49   : > { %v2620_v18 = vmul.f32 %v2617_v22, %v2463_v33  ;;  %2802 = vmatpush.msra.mxu3 %v2759_v63  ;;  %v2850_v63 = vld [vmem:[%s3741_s3 + $0x30] sm:$0xff] }
 0xc4a   : > { %2880 = vmatpush.msrb.mxu2 %v2850_v63  ;;  %v2904_v63 = vld [vmem:[%s4615_s10 + $0x8] sm:$0xff] }
 0xc4b   : > { %v2631_v28 = vrot.slane %v2620_v18, 6 }
 0xc4d   : > { %v2632_v36 = vsel %vm2400_vm13, %v2629_v34, %v2631_v28  ;;  %v4398_v61 = vpop.f32.mrf.mxu1 }
 0xc4e   : > { %v4383_v46 = vadd.f32 %v2632_v36, %v2613_v55  ;;  %v4409_v55 = vmul.f32 %v4403_v26, %v4366_v1  ;;  %v4431_v36 = vld [vmem:[%s4612_s22 + $0x8] ss:$0 sm:$0xff] }
 0xc50   : > { %v2466_v21 = vpop.f32.mrf.mxu0  ;;  %v2676_v11 = vrot.slane %v4409_v55, 2 }
 0xc51   : > { %v2621_v47 = vmul.f32 %v2617_v22, %v2466_v21 }
 0xc53   : > { %v2633_v37 = vrot.slane %v2621_v47, 6 }
 0xc55   : > { %v2634_v48 = vsel %vm2400_vm13, %v2631_v28, %v2633_v37  ;;  %v4405_v2 = vpop.f32.mrf.mxu1  ;;  %v2729_v28 = vrot.slane %v2719_v17, 6 }
 0xc56   : > { %v4389_v38 = vadd.f32 %v2634_v48, %v2614_v14  ;;  %v2688_v14 = vperm.slane %v4333_v58, 6  ;;  %v2720_v58 = vmul.f32 %v4415_v19, %v2511_v50 }
 0xc58   : > { %v2469_v3 = vpop.f32.mrf.mxu0  ;;  %v2689_v9 = vmul.f32 %v2688_v14, %v4366_v1  ;;  %v2730_v44 = vrot.slane %v2720_v58, 6 }
 0xc59   : > { %v2622_v32 = vmul.f32 %v2617_v22, %v2469_v3 }
 0xc5a   : > { %v2699_v34 = vrot.slane %v2689_v9, 4 }
 0xc5b   : > { %v2635_v27 = vrot.slane %v2622_v32, 6 }
 0xc5d   : > { %v2646_v49 = vadd.f32 %v2635_v27, %v2616_v23  ;;  %v2636_v39 = vsel %vm2400_vm13, %v2633_v37, %v2635_v27  ;;  %v2523_v20 = vpop.f32.mrf.mxu1  ;;  %v2690_v23 = vmul.f32 %v2688_v14, %v4369_v10  ;;  %v2691_v37 = vmul.f32 %v2688_v14, %v4374_v12 }
 0xc5e   : > { %v4394_v41 = vadd.f32 %v2636_v39, %v2615_v25  ;;  %v2749_v3 = vmul.f32 %v4431_v36, %v2523_v20 }
 0xc5f   : > { %v2700_v35 = vrot.slane %v2690_v23, 4  ;;  %v2849_v23 = vld [vmem:[%s3741_s3 + $0x28] sm:$0xff] }
 0xc60   : > { %v2472_v43 = vpop.f32.mrf.mxu0  ;;  %2881 = vmatpush.msrb.mxu2 %v2849_v23  ;;  %v2905_v23 = vld [vmem:[%s4615_s10 + $0x10] sm:$0xff] }
 0xc61   : > { %v2648_v29 = vmul.f32 %v2647_v45, %v2472_v43  ;;  %v2701_v47 = vsel %vm2597_vm15, %v2699_v34, %v2700_v35 }
 0xc63   : > { %v2653_v1 = vadd.f32 %v2648_v29, %v4377_v8  ;;  %v2731_v8 = vsel %vm2400_vm13, %v2729_v28, %v2730_v44  ;;  %v2722_v29 = vmul.f32 %v4415_v19, %v4398_v61 }
 0xc65   : > { %v2526_v60 = vpop.f32.mrf.mxu1 }
 0xc68   : > { %v2475_v54 = vpop.f32.mrf.mxu0 }
 0xc69   : > { %v2649_v48 = vmul.f32 %v2647_v45, %v2475_v54 }
 0xc6b   : > { %v2654_v12 = vadd.f32 %v2649_v48, %v4383_v46 }
 0xc70   : > { %v2478_v57 = vpop.f32.mrf.mxu0 }
 0xc78   : > { %v2481_v59 = vpop.f32.mrf.mxu0 }
 0xc79   : > { %v2651_v46 = vmul.f32 %v2647_v45, %v2481_v59 }
 0xc7b   : > { %v2656_v34 = vadd.f32 %v2651_v46, %v4394_v41  ;;  %v2723_v41 = vmul.f32 %v4415_v19, %v4405_v2 }
 0xc80   : > { %v2484_v5 = vpop.f32.mrf.mxu0 }
 0xc81   : > { %v2652_v6 = vmul.f32 %v2647_v45, %v2484_v5  ;;  %v2659_v25 = vmul.f32 %v4403_v26, %v2484_v5  ;;  %v2692_v5 = vmul.f32 %v2688_v14, %v4379_v13  ;;  %v2848_v13 = vld [vmem:[%s3741_s3 + $0x20] sm:$0xff] }
 0xc82   : > { %2882 = vmatpush.msrb.mxu2 %v2848_v13 }
 0xc83   : > { %v2657_v16 = vadd.f32 %v2652_v6, %v2646_v49  ;;  %v2669_v33 = vrot.slane %v2659_v25, 2  ;;  %v2702_v49 = vrot.slane %v2691_v37, 4  ;;  %v2650_v6 = vmul.f32 %v2647_v45, %v2478_v57 }
 0xc84   : > { %v2733_v25 = vsel %vm2400_vm13, %v2730_v44, %v2732_v51  ;;  %v2704_v57 = vrot.slane %v2692_v5, 4 }
 0xc85   : > { %v4419_v22 = vadd.f32 %v2676_v11, %v2657_v16  ;;  %v2703_v42 = vsel %vm2597_vm15, %v2700_v35, %v2702_v49  ;;  %v2750_v16 = vmul.f32 %v4431_v36, %v2526_v60  ;;  %v2655_v45 = vadd.f32 %v2650_v6, %v4389_v38 }
 0xc88   : > { %v2487_v30 = vpop.f32.mrf.mxu0 }
 0xc89   : > { %v2660_v31 = vmul.f32 %v4403_v26, %v2487_v30  ;;  %v2529_v30 = vpop.f32.mrf.mxu1 }
 0xc8a   : > { %v2751_v44 = vmul.f32 %v4431_v36, %v2529_v30 }
 0xc8b   : > { %v2670_v18 = vrot.slane %v2660_v31, 2  ;;  %v2693_v31 = vmul.f32 %v2688_v14, %v4385_v24  ;;  %v2846_v24 = vld [vmem:[%s3741_s3 + $0x10] sm:$0xff]  ;;  %v2705_v14 = vsel %vm2597_vm15, %v2702_v49, %v2704_v57  ;;  %v2845_v49 = vld [vmem:[%s3741_s3 + $0x8] sm:$0xff] }
 0xc8d   : > { %v2671_v10 = vsel %vm2566_vm14, %v2669_v33, %v2670_v18  ;;  %v2847_v33 = vld [vmem:[%s3741_s3 + $0x18] sm:$0xff]  ;;  %v2706_v38 = vrot.slane %v2693_v31, 4 }
 0xc8e   : > { %v2683_v21 = vadd.f32 %v2671_v10, %v2653_v1  ;;  %2883 = vmatpush.msrb.mxu2 %v2847_v33 }
 0xc90   : > { %v2713_v32 = vadd.f32 %v2701_v47, %v2683_v21  ;;  %v2490_v27 = vpop.f32.mrf.mxu0  ;;  %2884 = vmatpush.msrb.mxu2 %v2846_v24  ;;  %v2707_v21 = vsel %vm2597_vm15, %v2704_v57, %v2706_v38  ;;  %v2736_v47 = vrot.slane %v2723_v41, 6  ;;  %v2907_v57 = vld [vmem:[%s4615_s10 + $0x20] sm:$0x3] }
 0xc91   : > { %v2661_v4 = vmul.f32 %v4403_v26, %v2490_v27  ;;  %v2532_v37 = vpop.f32.mrf.mxu1 }
 0xc92   : > { %v2743_v50 = vadd.f32 %v2731_v8, %v2713_v32  ;;  %v2752_v19 = vmul.f32 %v4431_v36, %v2532_v37  ;;  %v2717_v32 = vadd.f32 %v2706_v38, %v4419_v22  ;;  %2885 = vmatpush.msrb.mxu2 %v2845_v49  ;;  %v3537_v22 = vmov 0  }
 0xc93   : > { %v2672_v39 = vrot.slane %v2661_v4, 2  ;;  %3373 = vset.pattern.permute.xlu1 %v3537_v22  ;;  %3374 = vset.pattern.permute.xlu0 %v3537_v22 }
 0xc94   : > { %v2754_v43 = vadd.f32 %v2749_v3, %v2743_v50  ;;  %v2747_v40 = vadd.f32 %v2736_v47, %v2717_v32  ;;  %3375 = vset.pattern.permute.xlu2 %v3537_v22  ;;  %2915 = vperm.xlu0 %3374, %v2904_v63  }
 0xc95   : > { %v2673_v52 = vsel %vm2566_vm14, %v2670_v18, %v2672_v39  ;;  %v2734_v18 = vrot.slane %v2722_v29, 6  ;;  %2920 = vperm.xlu2 %3375, %v2905_v23  }
 0xc96   : > { %v2684_v54 = vadd.f32 %v2673_v52, %v2654_v12  ;;  %3297 = vmatmul.msk.f32.vlgmr.msra.gmra.mxu3 %vm2771_vm7, %v2754_v43  ;;  %v3384_v12 = vld [vmem:[%s847_s15] ss:$0 sm:$0xff] }
 0xc97   : > { %v2735_v55 = vsel %vm2400_vm13, %v2732_v51, %v2734_v18  ;;  %v2737_v2 = vsel %vm2400_vm13, %v2734_v18, %v2736_v47  ;;  %v2903_v43 = vld [vmem:[%s4615_s10] sm:$0xff] }
 0xc98   : > { %v2493_v20 = vpop.f32.mrf.mxu0  ;;  %v2714_v9 = vadd.f32 %v2703_v42, %v2684_v54  ;;  %2910 = vperm.xlu1 %3373, %v2903_v43  }
 0xc99   : > { %v2662_v17 = vmul.f32 %v4403_v26, %v2493_v20  ;;  %v2535_v8 = vpop.f32.mrf.mxu1 }
 0xc9a   : > { %v2744_v58 = vadd.f32 %v2733_v25, %v2714_v9  ;;  %v2753_v4 = vmul.f32 %v4431_v36, %v2535_v8  ;;  %v2906_v9 = vld [vmem:[%s4615_s10 + $0x18] sm:$0xff] }
 0xc9b   : > { %v2674_v59 = vrot.slane %v2662_v17, 2 }
 0xc9c   : > { %v2755_v35 = vadd.f32 %v2750_v16, %v2744_v58  ;;  %v2758_v50 = vadd.f32 %v2753_v4, %v2747_v40 }
 0xc9d   : > { %v2675_v61 = vsel %vm2566_vm14, %v2672_v39, %v2674_v59  ;;  %v2677_v26 = vsel %vm2566_vm14, %v2674_v59, %v2676_v11  ;;  %v2844_v39 = vld [vmem:[%s3741_s3] sm:$0xff]  ;;  %2930 = vperm.xlu2 %3375, %v2907_v57  }
 0xc9e   : > { %v2685_v1 = vadd.f32 %v2675_v61, %v2655_v45  ;;  %v2686_v28 = vadd.f32 %v2677_v26, %v2656_v34  ;;  %3298 = vmatmul.msk.f32.gmra.mxu3 %vm2771_vm7, %v2755_v35  ;;  %2886 = vmatpush.msrb.mxu2 %v2844_v39 }
 0xca0   : > { %v2715_v10 = vadd.f32 %v2705_v14, %v2685_v1  ;;  %v2716_v60 = vadd.f32 %v2707_v21, %v2686_v28  ;;  %2925 = vperm.xlu1 %3373, %v2906_v9  }
 0xca2   : > { %v2745_v11 = vadd.f32 %v2735_v55, %v2715_v10  ;;  %v2746_v3 = vadd.f32 %v2737_v2, %v2716_v60 }
 0xca4   : > { %v2756_v48 = vadd.f32 %v2751_v44, %v2745_v11  ;;  %v2757_v27 = vadd.f32 %v2752_v19, %v2746_v3  ;;  %v3385_v11 = vld [vmem:[%s855_s27] ss:$0 sm:$0xff] }
 0xca6   : > { %3299 = vmatmul.msk.f32.gmra.mxu3 %vm2771_vm7, %v2756_v48 }
 0xcae   : > { %3300 = vmatmul.msk.f32.gmra.mxu3 %vm2771_vm7, %v2757_v27 }
 0xcb6   : > { %3301 = vmatmul.msk.f32.gmra.mxu3 %vm2771_vm7, %v2758_v50 }
 0xcef   : > { %v2921_v40 = vpop.permute.xlu2 %2920 }
 0xd06   : > { %v2916_v19 = vpop.permute.xlu0 %2915 }
 0xd0a   : > { %v2911_v47 = vpop.permute.xlu1 %2910 }
 0xd12   : > { %v2926_v39 = vpop.permute.xlu1 %2925 }
 0xd19   : > { %v2804_v36 = vpop.f32.mrf.mxu3 }
 0xd1a   : > { %v2805_v51 = vadd.f32 %v3384_v12, %v2804_v36 }
 0xd1c   : > { %v2819_v52 = vadd.f32 3.0, %v2805_v51 }
 0xd1e   : > { %v2824_v54 = vmax.f32 %v2819_v52, 0.0 }
 0xd20   : > { %v2829_v62 = vmin.f32 %v2824_v54, 6.0 }
 0xd21   : > { %v2807_v42 = vpop.f32.mrf.mxu3 }
 0xd22   : > { %v2834_v5 = vmul.f32 %v2829_v62, %v2805_v51  ;;  %v2808_v6 = vadd.f32 %v3384_v12, %v2807_v42  ;;  %v2931_v51 = vpop.permute.xlu2 %2930 }
 0xd24   : > { %v2839_v16 = vmul.f32 0.16666667, %v2834_v5  ;;  %v2820_v46 = vadd.f32 3.0, %v2808_v6 }
 0xd26   : > { %v2825_v20 = vmax.f32 %v2820_v46, 0.0  ;;  %3302 = vmatmul.msk.f32.vlgmr.msrb.gmra.mxu2 %vm2771_vm7, %v2839_v16 }
 0xd28   : > { %v2830_v25 = vmin.f32 %v2825_v20, 6.0 }
 0xd29   : > { %v2810_v29 = vpop.f32.mrf.mxu3 }
 0xd2a   : > { %v2835_v30 = vmul.f32 %v2830_v25, %v2808_v6  ;;  %v2811_v17 = vadd.f32 %v3384_v12, %v2810_v29 }
 0xd2c   : > { %v2840_v58 = vmul.f32 0.16666667, %v2835_v30  ;;  %v2821_v13 = vadd.f32 3.0, %v2811_v17 }
 0xd2e   : > { %v2826_v31 = vmax.f32 %v2821_v13, 0.0  ;;  %3303 = vmatmul.msk.f32.gmra.mxu2 %vm2771_vm7, %v2840_v58 }
 0xd30   : > { %v2831_v59 = vmin.f32 %v2826_v31, 6.0 }
 0xd31   : > { %v2813_v45 = vpop.f32.mrf.mxu3 }
 0xd32   : > { %v2836_v34 = vmul.f32 %v2831_v59, %v2811_v17  ;;  %v2814_v35 = vadd.f32 %v3384_v12, %v2813_v45 }
 0xd34   : > { %v2841_v33 = vmul.f32 0.16666667, %v2836_v34  ;;  %v2822_v18 = vadd.f32 3.0, %v2814_v35 }
 0xd36   : > { %v2827_v61 = vmax.f32 %v2822_v18, 0.0  ;;  %3304 = vmatmul.msk.f32.gmra.mxu2 %vm2771_vm7, %v2841_v33 }
 0xd38   : > { %v2832_v26 = vmin.f32 %v2827_v61, 6.0 }
 0xd39   : > { %v2816_v1 = vpop.f32.mrf.mxu3 }
 0xd3a   : > { %v2837_v28 = vmul.f32 %v2832_v26, %v2814_v35  ;;  %v2817_v24 = vadd.f32 %v3384_v12, %v2816_v1 }
 0xd3c   : > { %v2842_v14 = vmul.f32 0.16666667, %v2837_v28  ;;  %v2823_v38 = vadd.f32 3.0, %v2817_v24 }
 0xd3e   : > { %v2828_v41 = vmax.f32 %v2823_v38, 0.0  ;;  %3305 = vmatmul.msk.f32.gmra.mxu2 %vm2771_vm7, %v2842_v14 }
 0xd40   : > { %v2833_v44 = vmin.f32 %v2828_v41, 6.0 }
 0xd42   : > { %v2838_v10 = vmul.f32 %v2833_v44, %v2817_v24 }
 0xd44   : > { %v2843_v55 = vmul.f32 0.16666667, %v2838_v10 }
 0xd46   : > { %3306 = vmatmul.msk.f32.gmra.mxu2 %vm2771_vm7, %v2843_v55 }
 0xda9   : > { %v2888_v21 = vpop.f32.mrf.mxu2 }
 0xdaa   : > { %v2889_v37 = vadd.f32 %v3385_v11, %v2888_v21 }
 0xdac   : > { %v2933_v60 = vmul.f32 %v2911_v47, %v2889_v37 }
 0xdae   : > { %v2938_v48 = vadd.f32 %v2933_v60, %v4087_v53 }
 0xdb0   : > { %2943 = vst.msk [vmem:[%s3750_s1] sm:$0xff] %vm884_vm3, %v2938_v48 }
 0xdb1   : > { %v2891_v2 = vpop.f32.mrf.mxu2 }
 0xdb2   : > { %v2892_v3 = vadd.f32 %v3385_v11, %v2891_v2 }
 0xdb4   : > { %v2934_v32 = vmul.f32 %v2916_v19, %v2892_v3 }
 0xdb6   : > { %v2939_v27 = vadd.f32 %v2934_v32, %v4092_v56 }
 0xdb8   : > { %2944 = vst.msk [vmem:[%s3750_s1 + $0x8] sm:$0xff] %vm884_vm3, %v2939_v27 }
 0xdb9   : > { %v2894_v8 = vpop.f32.mrf.mxu2 }
 0xdba   : > { %v2895_v4 = vadd.f32 %v3385_v11, %v2894_v8 }
 0xdbc   : > { %v2935_v50 = vmul.f32 %v2921_v40, %v2895_v4 }
 0xdbe   : > { %v2940_v49 = vadd.f32 %v2935_v50, %v4097_v0 }
 0xdc0   : > { %2945 = vst.msk [vmem:[%s3750_s1 + $0x10] sm:$0xff] %vm884_vm3, %v2940_v49 }
 0xdc1   : > { %v2897_v53 = vpop.f32.mrf.mxu2 }
 0xdc2   : > { %v2898_v12 = vadd.f32 %v3385_v11, %v2897_v53 }
 0xdc4   : > { %v2936_v22 = vmul.f32 %v2926_v39, %v2898_v12 }
 0xdc6   : > { %v2941_v43 = vadd.f32 %v2936_v22, %v4102_v7 }
 0xdc8   : > { %2946 = vst.msk [vmem:[%s3750_s1 + $0x18] sm:$0xff] %vm884_vm3, %v2941_v43 }
 0xdc9   : > { %v2900_v56 = vpop.f32.mrf.mxu2 }
 0xdca   : > { %v2901_v36 = vadd.f32 %v3385_v11, %v2900_v56 }
 0xdcc   : > { %v2937_v52 = vmul.f32 %v2931_v51, %v2901_v36 }
 0xdce   : > { %v2942_v54 = vadd.f32 %v2937_v52, %v4107_v15 }
 0xdd0   : > { %2947 = vst.msk [vmem:[%s3750_s1 + $0x20] sm:$0x3] %vm897_vm2, %v2942_v54 }
 0xdd1 PF: > { %s4617_s23 = sld [smem:[#allocation5_spill]] }
 0xdd2   : > { %s4618_s0 = sld [smem:[#allocation3_spill]] }
 0xdd3   : > { %s4619_s30 = sld [smem:[#allocation4_spill]] }
 0xdd4   : > { %s4620_s20 = sld [smem:[#allocation6_spill]] }
 0xdd5   : > { %s4621_s21 = sld [smem:[#allocation7_spill]] }
 0xdd7   : > { %s29_s1 = sadd.s32 1, %s4617_s23  }
 0xdd8   : > { %p26_p8 = scmp.ge.s32.totalorder %s29_s1, 6  }
 0xdda   :  { %28 = sbr.rel (!%p26_p8) target bundleno = 15 (0xf), region = 175 }

</bundles_post_ra>
